<compile_context>
chip_gen: v7x
topology: tpu7x:2x2x1
jax: 0.10.0
libtpu: 0.0.40
codegen_flags: <defaults>
</compile_context>

<pallas_src>
import functools
import math

import jax
import jax.numpy as jnp
from jax.experimental import pallas as pl
from jax.experimental.pallas import tpu as pltpu

# Make the plain-JAX reference use true f32 matmuls so it is a faithful mirror of the
# f32 PyTorch forward.
jax.config.update("jax_default_matmul_precision", "highest")


def _round_up(x, m):
    return ((x + m - 1) // m) * m


def _vmem_budget_bytes():
    """~85% of per-TensorCore VMEM (64 MiB v7x, 128 MiB v5e/v6e), capped at 100 MiB."""
    cap = 64 * 1024 * 1024
    try:
        info = pltpu.get_tpu_info()
        cap = int(getattr(info, "vmem_capacity_bytes", cap) or cap)
    except Exception:
        pass
    return min(int(cap * 0.85), 100 * 1024 * 1024)


def _est_sim_vmem(tm, tn, hp):
    """Generous per-step VMEM estimate for the similarity/loss kernel."""
    return (2 * tm * hp * 2      # p_mp blocks (bf16, double-buffered)
            + 2 * hp * tn * 2    # p_sc^T blocks (bf16, double-buffered)
            + 2 * tm * tn * 2    # label blocks (bf16, double-buffered)
            + 4 * tm * tn * 4    # f32 sim / exp / masked intermediates
            + 2 * tm * 4         # output blocks
            + 3 * tm * 4         # online-softmax accumulators
            + (2 << 20))         # compiler-internal scratch headroom


def _pick_sim_tiles(n, hp, budget):
    """Largest (tm, tn) dividing n that obeys the (8,128) layout rules and fits the
    per-generation VMEM budget.  Prefers >=2 row blocks (v7x has 2 TensorCores) and
    256/512-wide tiles (v6e/v7x MXU is 2x256x256)."""
    tm_cands = [t for t in (512, 256, 128, 64, 32, 16, 8) if n % t == 0] or [n]
    tn_cands = [t for t in (512, 256, 128) if n % t == 0] or [n]
    tm_pref = [t for t in tm_cands if n // t >= 2] or tm_cands
    for tm in tm_pref:
        for tn in tn_cands:
            if _est_sim_vmem(tm, tn, hp) <= budget:
                return tm, tn
    return tm_cands[-1], tn_cands[-1]


def _pick_proj_tile(n):
    # p_sc^T output blocks are (hp, tile): tile is a lane dim, so it must be a
    # multiple of 128 or the full N.
    for t in (512, 256, 128):
        if n % t == 0 and n // t >= 2:
            return t
    return n


# --------------------------------------------------------------------------- #
# Kernel 1: projections (row-tiled; hoisted out of the N^2 loop)                #
# --------------------------------------------------------------------------- #
def _proj_kernel(z_mp_ref, z_sc_ref, w1t_ref, b1_ref, w2t_ref, b2_ref,
                 p_mp_ref, p_sc_t_ref, *, inv_temp):
    w1t = w1t_ref[...]
    b1 = b1_ref[...]
    w2t = w2t_ref[...]
    b2 = b2_ref[...]

    def proj(x):
        h = jnp.dot(x, w1t, preferred_element_type=jnp.float32) + b1
        h = jnp.where(h > 0, h, jnp.exp(h) - 1.0)            # ELU(alpha=1)
        return jnp.dot(h, w2t, preferred_element_type=jnp.float32) + b2

    # Fold 1/temperature into the mp branch (removes an N^2 scale from the hot loop);
    # store both projections as bf16 so the sim matmul uses the native MXU path.
    p_mp_ref[...] = (proj(z_mp_ref[...]) * inv_temp).astype(p_mp_ref.dtype)
    # Store the sc projection transposed ONCE per tile ([hp, tile]) so the hot loop
    # never transposes.
    p_sc_t_ref[...] = proj(z_sc_ref[...]).T.astype(p_sc_t_ref.dtype)


# --------------------------------------------------------------------------- #
# Kernel 2: 2-D tiled online-softmax similarity / per-row loss                  #
# --------------------------------------------------------------------------- #
def _logaddexp(a, b):
    # Stable log(exp(a) + exp(b)); returns b when a == -inf (b is finite here).
    mx = jnp.maximum(a, b)
    mn = jnp.minimum(a, b)
    return mx + jnp.log1p(jnp.exp(mn - mx))


def _sim_loss_kernel(p_mp_ref, p_sc_t_ref, labels_ref, out_ref,
                     m_sc, pos_sc, all_sc, *, log_eps):
    j = pl.program_id(1)

    @pl.when(j == 0)
    def _():
        m_sc[...] = jnp.full_like(m_sc, -jnp.inf)
        pos_sc[...] = jnp.zeros_like(pos_sc)
        all_sc[...] = jnp.zeros_like(all_sc)

    # sim already includes 1/temperature (folded into p_mp).  bf16 operands,
    # f32 MXU accumulation.
    sim = jnp.dot(p_mp_ref[...], p_sc_t_ref[...],
                  preferred_element_type=jnp.float32)             # [tm, tn]

    m_prev = m_sc[...]                                            # [tm, 1]
    m_new = jnp.maximum(m_prev, jnp.max(sim, axis=-1, keepdims=True))
    scale = jnp.exp(m_prev - m_new)                               # [tm, 1]
    p = jnp.exp(sim - m_new)                                      # [tm, tn]
    lbl = labels_ref[...].astype(jnp.float32)                     # binary, exact

    pos_sc[...] = scale * pos_sc[...] + jnp.sum(p * lbl, axis=-1, keepdims=True)
    all_sc[...] = scale * all_sc[...] + jnp.sum(p, axis=-1, keepdims=True)
    m_sc[...] = m_new

    @pl.when(j == pl.num_programs(1) - 1)
    def _():
        leps = jnp.float32(log_eps)
        # all_sc >= 1 (max term contributes exp(0)); pos_sc may be 0 -> log = -inf,
        # handled exactly by the stable logaddexp (result collapses to log(eps)).
        log_all = m_sc[...] + jnp.log(all_sc[...])
        log_pos = m_sc[...] + jnp.log(pos_sc[...])
        # log(all + eps) - log(pos + eps), finite everywhere.
        out_ref[...] = _logaddexp(log_all, leps) - _logaddexp(log_pos, leps)


# --------------------------------------------------------------------------- #
# Wrapper                                                                       #
# --------------------------------------------------------------------------- #
def prepare_proj_params(params, pad=16):
    """Transpose Linear weights to [in, out] and zero-pad widths to a multiple of 16
    (exact: padded channels stay 0).  Done once, outside the per-step path."""
    w1, b1, w2, b2 = params["w1"], params["b1"], params["w2"], params["b2"]
    h_in, h_mid = w1.shape[1], w1.shape[0]
    h_out = w2.shape[0]
    hp_mid = _round_up(h_mid, pad)
    hp_out = _round_up(h_out, pad)
    w1t = jnp.zeros((h_in, hp_mid), jnp.float32).at[:, :h_mid].set(w1.T)
    b1p = jnp.zeros((1, hp_mid), jnp.float32).at[:, :h_mid].set(b1)
    w2t = jnp.zeros((hp_mid, hp_out), jnp.float32).at[:h_mid, :h_out].set(w2.T)
    b2p = jnp.zeros((1, hp_out), jnp.float32).at[:, :h_out].set(b2)
    return {"w1t": w1t, "b1": b1p, "w2t": w2t, "b2": b2p}


def contrast_forward(z_mp, z_sc, labels, proj_params, temperature=0.5,
                     row_block=None, col_block=None):
    n, h_in = z_mp.shape
    assert z_sc.shape[0] == n and labels.shape == (n, n), (z_sc.shape, labels.shape)
    hp_mid = proj_params["w1t"].shape[1]
    hp = proj_params["w2t"].shape[1]              # projection output width (padded)
    budget = _vmem_budget_bytes()

    # Labels are binary -> exact in bf16; halves the dominant O(N^2) HBM read.
    labels_bf = labels.astype(jnp.bfloat16)

    # --- Kernel 1: projections (row-tiled; weights resident) ---
    tproj = _pick_proj_tile(n)
    p_mp, p_sc_t = pl.pallas_call(
        functools.partial(_proj_kernel, inv_temp=1.0 / temperature),
        out_shape=(jax.ShapeDtypeStruct((n, hp), jnp.bfloat16),
                   jax.ShapeDtypeStruct((hp, n), jnp.bfloat16)),
        grid_spec=pltpu.PrefetchScalarGridSpec(
            num_scalar_prefetch=0,
            grid=(n // tproj,),
            in_specs=[
                pl.BlockSpec((tproj, h_in), lambda i: (i, 0)),       # z_mp rows
                pl.BlockSpec((tproj, h_in), lambda i: (i, 0)),       # z_sc rows
                pl.BlockSpec((h_in, hp_mid), lambda i: (0, 0)),      # w1^T (resident)
                pl.BlockSpec((1, hp_mid), lambda i: (0, 0)),         # b1
                pl.BlockSpec((hp_mid, hp), lambda i: (0, 0)),        # w2^T (resident)
                pl.BlockSpec((1, hp), lambda i: (0, 0)),             # b2
            ],
            out_specs=(pl.BlockSpec((tproj, hp), lambda i: (i, 0)),  # p_mp (scaled)
                       pl.BlockSpec((hp, tproj), lambda i: (0, i))), # p_sc^T
        ),
        compiler_params=pltpu.CompilerParams(
            dimension_semantics=("parallel",),
            vmem_limit_bytes=budget),
    )(z_mp, z_sc, proj_params["w1t"], proj_params["b1"],
      proj_params["w2t"], proj_params["b2"])

    # --- Kernel 2: 2-D online-softmax similarity / loss ---
    auto_tm, auto_tn = _pick_sim_tiles(n, hp, int(budget * 0.8))
    tm = auto_tm if row_block is None else row_block
    tn = auto_tn if col_block is None else col_block
    assert n % tm == 0 and n % tn == 0, (n, tm, tn)

    row_loss = pl.pallas_call(
        functools.partial(_sim_loss_kernel, log_eps=math.log(1e-8)),
        out_shape=jax.ShapeDtypeStruct((n, 1), jnp.float32),
        grid_spec=pltpu.PrefetchScalarGridSpec(
            num_scalar_prefetch=0,
            grid=(n // tm, n // tn),
            in_specs=[
                pl.BlockSpec((tm, hp), lambda i, j: (i, 0)),   # p_mp row block
                pl.BlockSpec((hp, tn), lambda i, j: (0, j)),   # p_sc^T col block
                pl.BlockSpec((tm, tn), lambda i, j: (i, j)),   # labels tile stream
            ],
            # O(N) per-row loss, written once per row block at finalize (negligible
            # writeback next to the O(N^2) label stream).
            out_specs=pl.BlockSpec((tm, 1), lambda i, j: (i, 0)),
            scratch_shapes=[pltpu.VMEM((tm, 1), jnp.float32)] * 3,  # m, pos, all
        ),
        compiler_params=pltpu.CompilerParams(
            dimension_semantics=("parallel", "arbitrary"),  # rows megacore-sharded
            vmem_limit_bytes=budget),
    )(p_mp, p_sc_t, labels_bf)

    # Tiny O(N) finalize kept outside the N^2 kernel.
    return jnp.mean(row_loss)


# --------------------------------------------------------------------------- #
# Plain-JAX reference (mirrors the PyTorch forward, incl. its broadcast)        #
# --------------------------------------------------------------------------- #
def contrast_reference(z_mp, z_sc, labels, params, temperature=0.5):
    def proj(x):
        h = x @ params["w1"].T + params["b1"]
        h = jnp.where(h > 0, h, jnp.exp(h) - 1.0)
        return h @ params["w2"].T + params["b2"]

    p_mp = proj(z_mp)
    p_sc = proj(z_sc)
    sim = (p_mp @ p_sc.T) / temperature
    e = jnp.exp(sim)
    pos = jnp.sum(e * labels, axis=-1)                 # [N]
    alls = jnp.sum(e, axis=-1, keepdims=True)          # [N,1]
    ratio = (pos + 1e-8) / (alls + 1e-8)               # broadcasts to [N,N]
    return jnp.mean(-jnp.log(ratio))


def init_params(key, hidden_dim):
    k1, k2, k3, k4 = jax.random.split(key, 4)
    gain = 1.414
    std = gain * (2.0 / (hidden_dim + hidden_dim)) ** 0.5     # xavier_normal_
    bound = 1.0 / (hidden_dim ** 0.5)                          # Linear bias default
    return {
        "w1": std * jax.random.normal(k1, (hidden_dim, hidden_dim), jnp.float32),
        "b1": jax.random.uniform(k2, (hidden_dim,), jnp.float32, -bound, bound),
        "w2": std * jax.random.normal(k3, (hidden_dim, hidden_dim), jnp.float32),
        "b2": jax.random.uniform(k4, (hidden_dim,), jnp.float32, -bound, bound),
    }


if __name__ == "__main__":
    N, H = 256, 32          # nodes x hidden; exercises the (rows x cols) 2-D grid
    temperature = 0.5

    key = jax.random.PRNGKey(0)
    kp, kz1, kz2, kl = jax.random.split(key, 4)

    params = init_params(kp, H)
    # Scale embeddings so exp(sim/temperature) stays in f32 range for the
    # UNstabilized PyTorch-style reference (the Pallas kernel itself is
    # online-softmax stabilized and finite regardless).
    z_mp = 0.25 * jax.random.normal(kz1, (N, H), jnp.float32)
    z_sc = 0.25 * jax.random.normal(kz2, (N, H), jnp.float32)
    labels = (jax.random.uniform(kl, (N, N)) < 0.1).astype(jnp.float32)
    labels = jnp.maximum(labels, jnp.eye(N, dtype=jnp.float32))

    prepared = prepare_proj_params(params)
    loss = contrast_forward(z_mp, z_sc, labels, prepared, temperature,
                            row_block=128, col_block=128)   # grid = (2, 2)
    loss = jax.block_until_ready(loss)

    ref = contrast_reference(z_mp, z_sc, labels, params, temperature)
    assert bool(jnp.isfinite(loss)), loss
    # bf16 MXU operands -> ~1e-3 loss-level error; comfortably within 2e-2.
    assert jnp.allclose(loss, ref, rtol=2e-2, atol=2e-2), (loss, ref)

    print("KERNEL_OK")
</pallas_src>

<mosaic_0001>
module attributes {stable_mosaic.version = 11 : i64} {
  func.func @_proj_kernel(%arg0: i32, %arg1: memref<128x32xf32, #tpu.memory_space<vmem>>, %arg2: memref<128x32xf32, #tpu.memory_space<vmem>>, %arg3: memref<32x32xf32, #tpu.memory_space<vmem>>, %arg4: memref<1x32xf32, #tpu.memory_space<vmem>>, %arg5: memref<32x32xf32, #tpu.memory_space<vmem>>, %arg6: memref<1x32xf32, #tpu.memory_space<vmem>>, %arg7: memref<128x32xbf16, #tpu.memory_space<vmem>>, %arg8: memref<32x128xbf16, #tpu.memory_space<vmem>>) attributes {dimension_semantics = [#tpu.dimension_semantics<parallel>], iteration_bounds = array<i64: 2>, scalar_prefetch = 0 : i64, scratch_operands = 0 : i64, tpu.core_type = #tpu.core_type<tc>, window_params = [{transform_indices = @transform_0, window_bounds = array<i64: 128, 32>}, {transform_indices = @transform_1, window_bounds = array<i64: 128, 32>}, {pipeline_mode = #tpu.pipeline_mode<synchronous>, transform_indices = @transform_2, window_bounds = array<i64: 32, 32>}, {pipeline_mode = #tpu.pipeline_mode<synchronous>, transform_indices = @transform_3, window_bounds = array<i64: 1, 32>}, {pipeline_mode = #tpu.pipeline_mode<synchronous>, transform_indices = @transform_4, window_bounds = array<i64: 32, 32>}, {pipeline_mode = #tpu.pipeline_mode<synchronous>, transform_indices = @transform_5, window_bounds = array<i64: 1, 32>}, {transform_indices = @transform_6, window_bounds = array<i64: 128, 32>}, {transform_indices = @transform_7, window_bounds = array<i64: 32, 128>}]} {
    %c0 = arith.constant 0 : index
    %c0_0 = arith.constant 0 : index
    %0 = vector.load %arg3[%c0, %c0_0] : memref<32x32xf32, #tpu.memory_space<vmem>>, vector<32x32xf32>
    %c0_1 = arith.constant 0 : index
    %c0_2 = arith.constant 0 : index
    %1 = vector.load %arg4[%c0_1, %c0_2] : memref<1x32xf32, #tpu.memory_space<vmem>>, vector<1x32xf32>
    %c0_3 = arith.constant 0 : index
    %c0_4 = arith.constant 0 : index
    %2 = vector.load %arg5[%c0_3, %c0_4] : memref<32x32xf32, #tpu.memory_space<vmem>>, vector<32x32xf32>
    %c0_5 = arith.constant 0 : index
    %c0_6 = arith.constant 0 : index
    %3 = vector.load %arg6[%c0_5, %c0_6] : memref<1x32xf32, #tpu.memory_space<vmem>>, vector<1x32xf32>
    %c0_7 = arith.constant 0 : index
    %c0_8 = arith.constant 0 : index
    %4 = vector.load %arg1[%c0_7, %c0_8] : memref<128x32xf32, #tpu.memory_space<vmem>>, vector<128x32xf32>
    %cst = arith.constant dense<0.000000e+00> : vector<128x32xf32>
    %5 = tpu.matmul %4, %0, %cst {dimension_numbers = #tpu.dot_dimension_numbers<[1], [0], [0], [1], [0, 0, 1, 1], [], []>, precision = #tpu.contract_precision<fp32>} : vector<128x32xf32>, vector<32x32xf32>, vector<128x32xf32> -> vector<128x32xf32>
    %6 = vector.broadcast %1 : vector<1x32xf32> to vector<128x32xf32>
    %7 = arith.addf %5, %6 : vector<128x32xf32>
    %cst_9 = arith.constant 0.000000e+00 : f32
    %8 = vector.broadcast %cst_9 : f32 to vector<128x32xf32>
    %9 = arith.cmpf ogt, %7, %8 : vector<128x32xf32>
    %10 = math.exp %7 : vector<128x32xf32>
    %cst_10 = arith.constant 1.000000e+00 : f32
    %11 = vector.broadcast %cst_10 : f32 to vector<128x32xf32>
    %12 = arith.subf %10, %11 : vector<128x32xf32>
    %13 = arith.select %9, %7, %12 : vector<128x32xi1>, vector<128x32xf32>
    %cst_11 = arith.constant dense<0.000000e+00> : vector<128x32xf32>
    %14 = tpu.matmul %13, %2, %cst_11 {dimension_numbers = #tpu.dot_dimension_numbers<[1], [0], [0], [1], [0, 0, 1, 1], [], []>, precision = #tpu.contract_precision<fp32>} : vector<128x32xf32>, vector<32x32xf32>, vector<128x32xf32> -> vector<128x32xf32>
    %15 = vector.broadcast %3 : vector<1x32xf32> to vector<128x32xf32>
    %16 = arith.addf %14, %15 : vector<128x32xf32>
    %cst_12 = arith.constant 2.000000e+00 : f32
    %17 = vector.broadcast %cst_12 : f32 to vector<128x32xf32>
    %18 = arith.mulf %16, %17 : vector<128x32xf32>
    %19 = arith.truncf %18 : vector<128x32xf32> to vector<128x32xbf16>
    %c0_13 = arith.constant 0 : index
    %c0_14 = arith.constant 0 : index
    %20 = vector.load %arg7[%c0_13, %c0_14] : memref<128x32xbf16, #tpu.memory_space<vmem>>, vector<128x32xbf16>
    tpu.vector_store %arg7[%c0_13, %c0_14], %19 {strides = array<i32>} : memref<128x32xbf16, #tpu.memory_space<vmem>>, vector<128x32xbf16>,
    %c0_15 = arith.constant 0 : index
    %c0_16 = arith.constant 0 : index
    %21 = vector.load %arg2[%c0_15, %c0_16] : memref<128x32xf32, #tpu.memory_space<vmem>>, vector<128x32xf32>
    %cst_17 = arith.constant dense<0.000000e+00> : vector<128x32xf32>
    %22 = tpu.matmul %21, %0, %cst_17 {dimension_numbers = #tpu.dot_dimension_numbers<[1], [0], [0], [1], [0, 0, 1, 1], [], []>, precision = #tpu.contract_precision<fp32>} : vector<128x32xf32>, vector<32x32xf32>, vector<128x32xf32> -> vector<128x32xf32>
    %23 = vector.broadcast %1 : vector<1x32xf32> to vector<128x32xf32>
    %24 = arith.addf %22, %23 : vector<128x32xf32>
    %cst_18 = arith.constant 0.000000e+00 : f32
    %25 = vector.broadcast %cst_18 : f32 to vector<128x32xf32>
    %26 = arith.cmpf ogt, %24, %25 : vector<128x32xf32>
    %27 = math.exp %24 : vector<128x32xf32>
    %cst_19 = arith.constant 1.000000e+00 : f32
    %28 = vector.broadcast %cst_19 : f32 to vector<128x32xf32>
    %29 = arith.subf %27, %28 : vector<128x32xf32>
    %30 = arith.select %26, %24, %29 : vector<128x32xi1>, vector<128x32xf32>
    %cst_20 = arith.constant dense<0.000000e+00> : vector<128x32xf32>
    %31 = tpu.matmul %30, %2, %cst_20 {dimension_numbers = #tpu.dot_dimension_numbers<[1], [0], [0], [1], [0, 0, 1, 1], [], []>, precision = #tpu.contract_precision<fp32>} : vector<128x32xf32>, vector<32x32xf32>, vector<128x32xf32> -> vector<128x32xf32>
    %32 = vector.broadcast %3 : vector<1x32xf32> to vector<128x32xf32>
    %33 = arith.addf %31, %32 : vector<128x32xf32>
    %34 = tpu.transpose %33, [1, 0] : vector<128x32xf32> -> vector<32x128xf32>
    %35 = arith.truncf %34 : vector<32x128xf32> to vector<32x128xbf16>
    %c0_21 = arith.constant 0 : index
    %c0_22 = arith.constant 0 : index
    %36 = vector.load %arg8[%c0_21, %c0_22] : memref<32x128xbf16, #tpu.memory_space<vmem>>, vector<32x128xbf16>
    tpu.vector_store %arg8[%c0_21, %c0_22], %35 {strides = array<i32>} : memref<32x128xbf16, #tpu.memory_space<vmem>>, vector<32x128xbf16>,
    return
  }
  func.func @transform_0(%arg0: i32) -> (i32, i32) {
    %c0_i32 = arith.constant 0 : i32
    %c0_i32_0 = arith.constant 0 : i32
    return %arg0, %c0_i32 : i32, i32
  }
  func.func @transform_1(%arg0: i32) -> (i32, i32) {
    %c0_i32 = arith.constant 0 : i32
    %c0_i32_0 = arith.constant 0 : i32
    return %arg0, %c0_i32 : i32, i32
  }
  func.func @transform_2(%arg0: i32) -> (i32, i32) {
    %c0_i32 = arith.constant 0 : i32
    %c0_i32_0 = arith.constant 0 : i32
    %c0_i32_1 = arith.constant 0 : i32
    return %c0_i32, %c0_i32_0 : i32, i32
  }
  func.func @transform_3(%arg0: i32) -> (i32, i32) {
    %c0_i32 = arith.constant 0 : i32
    %c0_i32_0 = arith.constant 0 : i32
    %c0_i32_1 = arith.constant 0 : i32
    return %c0_i32, %c0_i32_0 : i32, i32
  }
  func.func @transform_4(%arg0: i32) -> (i32, i32) {
    %c0_i32 = arith.constant 0 : i32
    %c0_i32_0 = arith.constant 0 : i32
    %c0_i32_1 = arith.constant 0 : i32
    return %c0_i32, %c0_i32_0 : i32, i32
  }
  func.func @transform_5(%arg0: i32) -> (i32, i32) {
    %c0_i32 = arith.constant 0 : i32
    %c0_i32_0 = arith.constant 0 : i32
    %c0_i32_1 = arith.constant 0 : i32
    return %c0_i32, %c0_i32_0 : i32, i32
  }
  func.func @transform_6(%arg0: i32) -> (i32, i32) {
    %c0_i32 = arith.constant 0 : i32
    %c0_i32_0 = arith.constant 0 : i32
    return %arg0, %c0_i32 : i32, i32
  }
  func.func @transform_7(%arg0: i32) -> (i32, i32) {
    %c0_i32 = arith.constant 0 : i32
    %c0_i32_0 = arith.constant 0 : i32
    return %c0_i32, %arg0 : i32, i32
  }
}

</mosaic_0001>

<bundles_post_ra>
// kernel: tpu_custom_call.1
= control target key start
LH: loop header
LB: loop body
LE: loop exit
PB: predicated region body
PF: predicated region fallthrough
CT: control target
= control target key end

     0   :  { %13 = vsyncpa [#allocation3], 0  ;;  %s9329_s0 = inlined_call_operand.vmem [shape: f32[256,32], index: 0, kind: input, shape index: {}]   ;;  %s9330_s1 = inlined_call_operand.vmem [shape: f32[256,32], index: 1, kind: input, shape index: {}]   ;;  %s9331_s2 = inlined_call_operand.vmem [shape: f32[32,32], index: 2, kind: input, shape index: {}]   ;;  %s9332_s3 = inlined_call_operand.vmem [shape: f32[1,32], index: 3, kind: input, shape index: {}]   ;;  %s9333_s4 = inlined_call_operand.vmem [shape: f32[32,32], index: 4, kind: input, shape index: {}]   ;;  %s9334_s5 = inlined_call_operand.vmem [shape: f32[1,32], index: 5, kind: input, shape index: {}]   ;;  %s9335_s6 = inlined_call_operand.vmem [shape: bf16[256,32], index: 6, kind: output, shape index: {0}]   ;;  %s9336_s7 = inlined_call_operand.hbm [shape: bf16[32,256], index: 7, kind: output, shape index: {1}]  }
   0x1   :  { %15 = vsyncpa [#allocation3 + $0x1], 0  ;;  %s7650_s24 = smov 0   ;;  %s7652_s25 = smov 0  }
   0x2   :  { %s7654_s26 = smov 0   ;;  %s7656_s27 = smov 0  }
   0x3 LB: > { %s7671_s28 = sadd.s32 4294967295, %s7604_s27   ;;  %s5512_s29 = sadd.s32 4294967294, %s7604_s27   ;;  %s7604_s27 = sphi %s7656_s27, %s9366_s27   ;;  %s7600_s26 = sphi %s7654_s26, %s9365_s26   ;;  %s7596_s25 = sphi %s7652_s25, %s9364_s25   ;;  %s7592_s24 = sphi %s7650_s24, %s9363_s24  }
   0x4   : > { %s7675_s30 = sadd.s32 1, %s7604_s27   ;;  %s190_s8 = sadd.s32 1, %s7600_s26 }
   0x5   : > { %s187_s9 = ssub.s32 %s7604_s27, %s7675_s30  ;;  %p200_p0 = scmp.ne.s32.totalorder %s7600_s26, %s7596_s25 }
   0x6   : > { %p188_p1 = scmp.eq.s32.totalorder %s187_s9, 0  ;;  %p201_p2 = scmp.eq.s32.totalorder %s7671_s28, 1 }
   0x7   : > { %p206_p3 = scmp.ne.s32.totalorder %s7596_s25, %s7592_s24  ;;  %p207_p4 = scmp.eq.s32.totalorder %s5512_s29, 1 }
   0x8   : > { %s7686_s10 = scalar_select %p188_p1, %s7600_s26, %s190_s8  }
   0x9   : > { %p7688_p5 = por %p201_p2, %p200_p0  ;;  %p7692_p6 = por %p207_p4, %p206_p3 }
   0xa   : > { %p5515_p7 = scmp.ge.s32.totalorder %s7604_s27, 1  ;;  %p255_p8 = scmp.lt.s32.totalorder %s7604_s27, 3 }
   0xc   : > { %p256_p9 = pnand %p5515_p7, %p255_p8 }
   0xd   : > { %v315_v0 = vld [vmem:[%s9331_s2] sm:$0xff] (!%p256_p9)  ;;  %v316_v1 = vld [vmem:[%s9331_s2 + $0x8] sm:$0xff] (!%p256_p9)  ;;  %v317_v2 = vld [vmem:[%s9331_s2 + $0x10] sm:$0xff] (!%p256_p9)  ;;  %s5517_s19 = sshll.u32 (!%p256_p9), %s7671_s28, 4  ;;  %vm347_vm0 = vcmask (!%p256_p9), 261120  }
   0xe   : > { %259 = sbr.rel (%p256_p9) target bundleno = 1179 (0x49b), region = 44  ;;  %v397_v3 = vand.u32 (!%p256_p9), 4294901760, %v315_v0  ;;  %v400_v4 = vand.u32 (!%p256_p9), 4294901760, %v316_v1  ;;  %v318_v5 = vld [vmem:[%s9331_s2 + $0x18] sm:$0xff] (!%p256_p9)  ;;  %v403_v6 = vand.u32 (!%p256_p9), 4294901760, %v317_v2  ;;  %p298_p10 = scmp.lt.s32.totalorder (!%p256_p9), %s5517_s19, 31 }
   0xf   : > { %v406_v7 = vand.u32 (!%p256_p9), 4294901760, %v318_v5 }
  0x10   : > { %v7711_v8 = vpack.c.bf16 (!%p256_p9), %v400_v4, %v397_v3  ;;  %v7715_v9 = vsub.f32 (!%p256_p9), %v315_v0, %v397_v3  ;;  %v7717_v10 = vsub.f32 (!%p256_p9), %v316_v1, %v400_v4  ;;  %v7719_v11 = vsub.f32 (!%p256_p9), %v317_v2, %v403_v6 }
  0x11   : > { %v7721_v12 = vpack.c.bf16 (!%p256_p9), %v406_v7, %v403_v6  ;;  %v7723_v13 = vsub.f32 (!%p256_p9), %v318_v5, %v406_v7 }
  0x12   : > { %6861 = vmatprep.subr.bf16.mxu0 (!%p256_p9), %v7711_v8  ;;  %v628_v14 = vand.u32 (!%p256_p9), 4294901760, %v7715_v9  ;;  %v635_v15 = vand.u32 (!%p256_p9), 4294901760, %v7717_v10  ;;  %v642_v16 = vand.u32 (!%p256_p9), 4294901760, %v7719_v11 }
  0x13   : > { %6863 = vmatpush3.bf16.msra.mxu0 (!%p256_p9), %v7711_v8  ;;  %v649_v17 = vand.u32 (!%p256_p9), 4294901760, %v7723_v13 }
  0x14   : > { %6865 = vmatprep.subr.bf16.mxu0 (!%p256_p9), %v7721_v12  ;;  %v629_v19 = vsub.f32 (!%p256_p9), %v7715_v9, %v628_v14  ;;  %v636_v20 = vsub.f32 (!%p256_p9), %v7717_v10, %v635_v15  ;;  %v7748_v23 = vsub.f32 (!%p256_p9), %v7719_v11, %v642_v16  ;;  %v7750_v24 = vpack.c.bf16 (!%p256_p9), %v635_v15, %v628_v14 }
  0x15   : > { %s9368_s19 = smov (!%p298_p10, %s5517_s19), 31  ;;  %v7761_v31 = vsub.f32 %v7723_v13, %v649_v17 }
  0x16   : > { %s5518_s22 = sshll.u32 %s9368_s19, 3  ;;  %v630_v33 = vand.u32 4294901760, %v629_v19  ;;  %v637_v34 = vand.u32 4294901760, %v636_v20 }
  0x17   : > { %s7736_s8 = scalar_lea.vmem %s9329_s0, %s5518_s22  ;;  %6867 = vmatpush3.bf16.msra.mxu0 %v7721_v12  ;;  %s8058_s14 = scalar_lea.vmem %s9330_s1, %s5518_s22 }
  0x18   : > { %v325_v18 = vld [vmem:[%s7736_s8] sm:$0xff]  ;;  %v326_v21 = vld [vmem:[%s7736_s8 + $0x8] sm:$0xff]  ;;  %v327_v22 = vld [vmem:[%s7736_s8 + $0x10] sm:$0xff]  ;;  %v7777_v42 = vpack.c.bf16 %v637_v34, %v630_v33  ;;  %s5578_s22 = sshll.u32 %s7671_s28, 6  ;;  %s7606_s28 = smov [#allocation2]  }
  0x19   : > { %v349_v25 = vsel %vm347_vm0, %v325_v18, 0  ;;  %v352_v26 = vsel %vm347_vm0, %v326_v21, 0  ;;  %v355_v27 = vsel %vm347_vm0, %v327_v22, 0  ;;  %v328_v28 = vld [vmem:[%s7736_s8 + $0x18] sm:$0xff]  ;;  %v329_v29 = vld [vmem:[%s7736_s8 + $0x20] sm:$0xff]  ;;  %v330_v30 = vld [vmem:[%s7736_s8 + $0x28] sm:$0xff] }
  0x1a   : > { %v7763_v32 = vand.u32 4294901760, %v349_v25  ;;  %v7765_v35 = vand.u32 4294901760, %v352_v26  ;;  %v331_v36 = vld [vmem:[%s7736_s8 + $0x30] sm:$0xff]  ;;  %v7769_v37 = vand.u32 4294901760, %v355_v27  ;;  %v358_v38 = vsel %vm347_vm0, %v328_v28, 0  ;;  %v332_v45 = vld [vmem:[%s7736_s8 + $0x38] sm:$0xff]  ;;  %6869 = vmatprep.subr.bf16.mxu0 %v7777_v42 }
  0x1b   : > { %v361_v39 = vsel %vm347_vm0, %v329_v29, 0  ;;  %v364_v40 = vsel %vm347_vm0, %v330_v30, 0  ;;  %v7782_v44 = vand.u32 4294901760, %v358_v38  ;;  %v367_v49 = vsel %vm347_vm0, %v331_v36, 0  ;;  %v333_v2 = vld [vmem:[%s7736_s8 + $0x40] sm:$0xff]  ;;  %v334_v19 = vld [vmem:[%s7736_s8 + $0x48] sm:$0xff] }
  0x1c   : > { %v7775_v41 = vsub.f32 %v349_v25, %v7763_v32  ;;  %v7780_v43 = vsub.f32 %v352_v26, %v7765_v35  ;;  %v7786_v46 = vsub.f32 %v355_v27, %v7769_v37  ;;  %v7788_v47 = vand.u32 4294901760, %v361_v39  ;;  %v335_v20 = vld [vmem:[%s7736_s8 + $0x50] sm:$0xff]  ;;  %v336_v33 = vld [vmem:[%s7736_s8 + $0x58] sm:$0xff]  ;;  %v337_v34 = vld [vmem:[%s7736_s8 + $0x60] sm:$0xff] }
  0x1d   : > { %v7790_v48 = vand.u32 4294901760, %v364_v40  ;;  %v7797_v52 = vsub.f32 %v358_v38, %v7782_v44  ;;  %v7799_v53 = vand.u32 4294901760, %v367_v49  ;;  %v370_v57 = vsel %vm347_vm0, %v332_v45, 0  ;;  %v338_v36 = vld [vmem:[%s7736_s8 + $0x68] sm:$0xff] }
  0x1e   : > { %v467_v50 = vand.u32 4294901760, %v7775_v41  ;;  %v477_v51 = vand.u32 4294901760, %v7780_v43  ;;  %v487_v54 = vand.u32 4294901760, %v7786_v46  ;;  %v7803_v55 = vsub.f32 %v361_v39, %v7788_v47 }
  0x1f   : > { %v7806_v56 = vsub.f32 %v364_v40, %v7790_v48  ;;  %v497_v60 = vand.u32 4294901760, %v7797_v52  ;;  %v7817_v61 = vsub.f32 %v367_v49, %v7799_v53  ;;  %v7824_v1 = vand.u32 4294901760, %v370_v57 }
  0x20   : > { %v468_v58 = vsub.f32 %v7775_v41, %v467_v50  ;;  %v478_v59 = vsub.f32 %v7780_v43, %v477_v51  ;;  %v488_v62 = vsub.f32 %v7786_v46, %v487_v54  ;;  %v507_v63 = vand.u32 4294901760, %v7803_v55 }
  0x21   : > { %v517_v0 = vand.u32 4294901760, %v7806_v56  ;;  %v498_v5 = vsub.f32 %v7797_v52, %v497_v60  ;;  %v527_v6 = vand.u32 4294901760, %v7817_v61  ;;  %v7838_v18 = vsub.f32 %v370_v57, %v7824_v1  ;;  %v339_v57 = vld [vmem:[%s7736_s8 + $0x70] sm:$0xff] }
  0x22   : > { %v469_v3 = vand.u32 4294901760, %v468_v58  ;;  %v479_v4 = vand.u32 4294901760, %v478_v59  ;;  %v489_v7 = vand.u32 4294901760, %v488_v62  ;;  %v508_v14 = vsub.f32 %v7803_v55, %v507_v63 }
  0x23   : > { %v518_v15 = vsub.f32 %v7806_v56, %v517_v0  ;;  %v499_v21 = vand.u32 4294901760, %v498_v5  ;;  %v373_v22 = vsel %vm347_vm0, %v333_v2, 0  ;;  %v644_v25 = vand.u32 4294901760, %v7748_v23 }
  0x24   : > { %6100 = vmatprep.mubr.f32.mxu0 %v469_v3  ;;  %v7846_v26 = vpack.c.bf16 %v7717_v10, %v7715_v9  ;;  %v509_v27 = vand.u32 4294901760, %v508_v14  ;;  %v528_v28 = vsub.f32 %v7817_v61, %v527_v6  ;;  %v537_v29 = vand.u32 4294901760, %v7838_v18 }
  0x25   : > { %6101 = vmatmul.mubr.f32.vlgmr.msra.gmra.mrb[0].mxu0 %v479_v4  ;;  %v7852_v30 = vand.u32 4294901760, %v373_v22  ;;  %v519_v23 = vand.u32 4294901760, %v518_v15  ;;  %v651_v9 = vand.u32 4294901760, %v7761_v31  ;;  %v376_v10 = vsel %vm347_vm0, %v334_v19, 0 }
  0x26   : > { %6871 = vmatpush3.bf16.msra.mxu0 %v7777_v42  ;;  %6103 = vmatprep.mubr.f32.mxu0 %v489_v7  ;;  %v379_v38 = vsel %vm347_vm0, %v335_v20, 0  ;;  %v538_v39 = vsub.f32 %v7838_v18, %v537_v29  ;;  %v7867_v45 = vand.u32 4294901760, %v376_v10  ;;  %v382_v31 = vsel %vm347_vm0, %v336_v33, 0  ;;  %v340_v7 = vld [vmem:[%s7736_s8 + $0x78] sm:$0xff]  ;;  %s9286_s8 = scalar_lea.hbm %s9336_s7, %s5578_s22 }
  0x27   : > { %v7865_v40 = vsub.f32 %v373_v22, %v7852_v30  ;;  %v7869_v49 = vand.u32 4294901760, %v379_v38  ;;  %v7872_v58 = vpack.c.bf16 %v651_v9, %v644_v25  ;;  %v385_v59 = vsel %vm347_vm0, %v337_v34, 0 }
  0x28   : > { %v388_v62 = vsel %vm347_vm0, %v338_v36, 0  ;;  %v529_v2 = vand.u32 4294901760, %v528_v28  ;;  %v7879_v4 = vsub.f32 %v376_v10, %v7867_v45  ;;  %v7886_v14 = vand.u32 4294901760, %v382_v31 }
  0x29   : > { %6104 = vmatmul.mubr.f32.gmra.mrb[2].mxu0 %v499_v21  ;;  %v547_v3 = vand.u32 4294901760, %v7865_v40  ;;  %v7882_v5 = vsub.f32 %v379_v38, %v7869_v49  ;;  %6873 = vmatprep.subr.bf16.mxu0 %v7872_v58  ;;  %v7888_v15 = vand.u32 4294901760, %v385_v59  ;;  %v7890_v19 = vand.u32 4294901760, %v388_v62 }
  0x2a   : > { %6106 = vmatprep.mubr.f32.mxu0 %v509_v27  ;;  %v391_v20 = vsel %vm347_vm0, %v339_v57, 0  ;;  %v9338_v22 = vand.u32 4294901760, %v7879_v4  ;;  %6875 = vmatpush3.bf16.msra.mxu0 %v7872_v58  ;;  %v539_v28 = vand.u32 4294901760, %v538_v39  ;;  %v7902_v33 = vsub.f32 %v382_v31, %v7886_v14 }
  0x2b   : > { %v548_v21 = vsub.f32 %v7865_v40, %v547_v3  ;;  %v9337_v25 = vand.u32 4294901760, %v7882_v5  ;;  %v7899_v27 = vand.u32 4294901760, %v391_v20  ;;  %v7905_v34 = vsub.f32 %v385_v59, %v7888_v15  ;;  %6877 = vmatprep.subr.bf16.mxu0 %v7846_v26 }
  0x2c   : > { %v394_v36 = vsel %vm347_vm0, %v340_v7, 0  ;;  %v558_v10 = vsub.f32 %v7879_v4, %v9338_v22  ;;  %v7916_v39 = vsub.f32 %v388_v62, %v7890_v19  ;;  %v9339_v57 = vand.u32 4294901760, %v7902_v33 }
  0x2d   : > { %6107 = vmatmul.mubr.f32.gmra.mrb[4].mxu0 %v519_v23  ;;  %v549_v9 = vand.u32 4294901760, %v548_v21  ;;  %v568_v38 = vsub.f32 %v7882_v5, %v9337_v25  ;;  %v587_v31 = vand.u32 4294901760, %v7905_v34  ;;  %v7921_v59 = vsub.f32 %v391_v20, %v7899_v27 }
  0x2e   : > { %6109 = vmatprep.mubr.f32.mxu0 %v529_v2  ;;  %v7923_v23 = vand.u32 4294901760, %v394_v36  ;;  %v7929_v7 = vpack.c.bf16 %v649_v17, %v642_v16  ;;  %v559_v21 = vand.u32 4294901760, %v558_v10  ;;  %v578_v62 = vsub.f32 %v7902_v33, %v9339_v57 }
  0x2f   : > { %v597_v2 = vand.u32 4294901760, %v7916_v39  ;;  %v569_v20 = vand.u32 4294901760, %v568_v38  ;;  %v588_v22 = vsub.f32 %v7905_v34, %v587_v31  ;;  %v607_v16 = vand.u32 4294901760, %v7921_v59 }
  0x30   : > { %v7936_v25 = vsub.f32 %v394_v36, %v7923_v23  ;;  %v579_v17 = vand.u32 4294901760, %v578_v62 }
  0x31   : > { %6110 = vmatmul.mubr.f32.gmra.mrb[6].mxu0 %v539_v28  ;;  %v598_v28 = vsub.f32 %v7916_v39, %v597_v2  ;;  %v589_v57 = vand.u32 4294901760, %v588_v22  ;;  %v608_v36 = vsub.f32 %v7921_v59, %v607_v16  ;;  %v7955_v22 = vpack.c.bf16 %v7723_v13, %v7719_v11 }
  0x32   : > { %6112 = vmatprep.mubr.f32.mxu0 %v549_v9  ;;  %v617_v10 = vand.u32 4294901760, %v7936_v25  ;;  %v9351_v11 = vand.u32 4294901760, %v7879_v4  ;;  %v9352_v13 = vand.u32 4294901760, %v7882_v5 }
  0x33   : > { %v599_v9 = vand.u32 4294901760, %v598_v28 }
  0x34   : > { %v618_v38 = vsub.f32 %v7936_v25, %v617_v10 }
  0x35   : > { %6113 = vmatmul.mubr.f32.gmra.mrb[8].mxu0 %v559_v21  ;;  %v609_v21 = vand.u32 4294901760, %v608_v36 }
  0x36   : > { %6115 = vmatprep.mubr.f32.mxu0 %v569_v20  ;;  %v619_v62 = vand.u32 4294901760, %v618_v38 }
  0x39   : > { %6116 = vmatmul.mubr.f32.gmra.mrb[10].mxu0 %v579_v17 }
  0x3a   : > { %6118 = vmatprep.mubr.f32.mxu0 %v589_v57 }
  0x3d   : > { %6119 = vmatmul.mubr.f32.gmra.mrb[12].mxu0 %v599_v9  ;;  %v2898_v9 = vld [vmem:[%s8058_s14 + $0x58] sm:$0xff] }
  0x3e   : > { %6121 = vmatprep.mubr.f32.mxu0 %v609_v21 }
  0x41   : > { %6122 = vmatmul.mubr.f32.gmra.mrb[14].mxu0 %v619_v62 }
  0x42   : > { %6132 = vmatprep.mubr.f32.mxu0 %v7763_v32 }
  0x45   : > { %6133 = vmatmul.mubr.f32.vlgmr.msra.gmra.mrb[0].mxu0 %v7765_v35 }
  0x46   : > { %6879 = vmatpush3.bf16.msra.mxu0 %v7846_v26  ;;  %6135 = vmatprep.mubr.f32.mxu0 %v7769_v37 }
  0x47   : > { %6881 = vmatprep.subr.bf16.mxu0 %v7955_v22 }
  0x49   : > { %6136 = vmatmul.mubr.f32.gmra.mrb[2].mxu0 %v7782_v44 }
  0x4a   : > { %6138 = vmatprep.mubr.f32.mxu0 %v7788_v47  ;;  %6883 = vmatpush3.bf16.msra.mxu0 %v7955_v22 }
  0x4b   : > { %6885 = vmatprep.subr.bf16.mxu0 %v7711_v8 }
  0x4d   : > { %6139 = vmatmul.mubr.f32.gmra.mrb[4].mxu0 %v7790_v48 }
  0x4e   : > { %6141 = vmatprep.mubr.f32.mxu0 %v7799_v53 }
  0x51   : > { %6142 = vmatmul.mubr.f32.gmra.mrb[6].mxu0 %v7824_v1 }
  0x52   : > { %6144 = vmatprep.mubr.f32.mxu0 %v7852_v30 }
  0x55   : > { %6145 = vmatmul.mubr.f32.gmra.mrb[8].mxu0 %v7867_v45 }
  0x56   : > { %6147 = vmatprep.mubr.f32.mxu0 %v7869_v49 }
  0x59   : > { %6148 = vmatmul.mubr.f32.gmra.mrb[10].mxu0 %v7886_v14 }
  0x5a   : > { %6150 = vmatprep.mubr.f32.mxu0 %v7888_v15 }
  0x5d   : > { %6151 = vmatmul.mubr.f32.gmra.mrb[12].mxu0 %v7890_v19 }
  0x5e   : > { %6153 = vmatprep.mubr.f32.mxu0 %v7899_v27 }
  0x61   : > { %6154 = vmatmul.mubr.f32.gmra.mrb[14].mxu0 %v7923_v23 }
  0x62   : > { %6164 = vmatprep.mubr.f32.mxu0 %v7775_v41  ;;  %v9353_v41 = vand.u32 4294901760, %v7902_v33 }
  0x65   : > { %6165 = vmatmul.mubr.f32.vlgmr.msra.gmra.mrb[0].mxu0 %v7780_v43 }
  0x66   : > { %6887 = vmatpush3.bf16.msra.mxu0 %v7711_v8  ;;  %6167 = vmatprep.mubr.f32.mxu0 %v7786_v46  ;;  %v2889_v46 = vld [vmem:[%s8058_s14 + $0x10] sm:$0xff] }
  0x67   : > { %6889 = vmatprep.subr.bf16.mxu0 %v7721_v12 }
  0x69   : > { %6168 = vmatmul.mubr.f32.gmra.mrb[2].mxu0 %v7797_v52 }
  0x6a   : > { %6170 = vmatprep.mubr.f32.mxu0 %v7803_v55  ;;  %6891 = vmatpush3.bf16.msra.mxu0 %v7721_v12  ;;  %v2892_v55 = vld [vmem:[%s8058_s14 + $0x28] sm:$0xff] }
  0x6b   : > { %6893 = vmatprep.subr.bf16.mxu0 %v7750_v24 }
  0x6d   : > { %6171 = vmatmul.mubr.f32.gmra.mrb[4].mxu0 %v7806_v56  ;;  %v2893_v56 = vld [vmem:[%s8058_s14 + $0x30] sm:$0xff] }
  0x6e   : > { %6173 = vmatprep.mubr.f32.mxu0 %v7817_v61 }
  0x71   : > { %6174 = vmatmul.mubr.f32.gmra.mrb[6].mxu0 %v7838_v18 }
  0x72   : > { %6176 = vmatprep.mubr.f32.mxu0 %v7865_v40  ;;  %v2895_v40 = vld [vmem:[%s8058_s14 + $0x40] sm:$0xff] }
  0x75   : > { %6177 = vmatmul.mubr.f32.gmra.mrb[8].mxu0 %v7879_v4 }
  0x76   : > { %6179 = vmatprep.mubr.f32.mxu0 %v7882_v5 }
  0x79   : > { %6180 = vmatmul.mubr.f32.gmra.mrb[10].mxu0 %v7902_v33 }
  0x7a   : > { %6182 = vmatprep.mubr.f32.mxu0 %v7905_v34 }
  0x7d   : > { %6183 = vmatmul.mubr.f32.gmra.mrb[12].mxu0 %v7916_v39  ;;  %v2896_v39 = vld [vmem:[%s8058_s14 + $0x48] sm:$0xff] }
  0x7e   : > { %6185 = vmatprep.mubr.f32.mxu0 %v7921_v59  ;;  %v2897_v59 = vld [vmem:[%s8058_s14 + $0x50] sm:$0xff]  ;;  %v2931_v36 = vsel %vm347_vm0, %v2896_v39, 0  ;;  %v2902_v39 = vld [vmem:[%s8058_s14 + $0x78] sm:$0xff] }
  0x81   : > { %6186 = vmatmul.mubr.f32.gmra.mrb[14].mxu0 %v7936_v25 }
  0x82   : > { %6196 = vmatprep.mubr.f32.mxu0 %v467_v50  ;;  %v2890_v50 = vld [vmem:[%s8058_s14 + $0x18] sm:$0xff] }
  0x85   : > { %6197 = vmatmul.mubr.f32.vlgmr.msra.gmra.mrb[0].mxu0 %v477_v51  ;;  %v2891_v51 = vld [vmem:[%s8058_s14 + $0x20] sm:$0xff] }
  0x86   : > { %6895 = vmatpush3.bf16.msra.mxu0 %v7750_v24  ;;  %6199 = vmatprep.mubr.f32.mxu0 %v487_v54 }
  0x87   : > { %6897 = vmatprep.subr.bf16.mxu0 %v7929_v7 }
  0x89   : > { %6200 = vmatmul.mubr.f32.gmra.mrb[2].mxu0 %v497_v60  ;;  %v2916_v60 = vsel %vm347_vm0, %v2891_v51, 0 }
  0x8a   : > { %6202 = vmatprep.mubr.f32.mxu0 %v507_v63  ;;  %6899 = vmatpush3.bf16.msra.mxu0 %v7929_v7 }
  0x8b   : > { %6901 = vmatprep.subr.bf16.mxu0 %v7711_v8 }
  0x8d   : > { %6203 = vmatmul.mubr.f32.gmra.mrb[4].mxu0 %v517_v0  ;;  %v2919_v0 = vsel %vm347_vm0, %v2892_v55, 0  ;;  %v2901_v55 = vld [vmem:[%s8058_s14 + $0x70] sm:$0xff] }
  0x8e   : > { %6205 = vmatprep.mubr.f32.mxu0 %v527_v6 }
  0x91   : > { %6206 = vmatmul.mubr.f32.gmra.mrb[6].mxu0 %v537_v29  ;;  %v8106_v29 = vand.u32 4294901760, %v2916_v60 }
  0x92   : > { %6208 = vmatprep.mubr.f32.mxu0 %v547_v3 }
  0x93   : > { %v8126_v34 = vsub.f32 %v2916_v60, %v8106_v29 }
  0x95   : > { %6209 = vmatmul.mubr.f32.gmra.mrb[8].mxu0 %v9351_v11 }
  0x96   : > { %6211 = vmatprep.mubr.f32.mxu0 %v9352_v13 }
  0x99   : > { %6212 = vmatmul.mubr.f32.gmra.mrb[10].mxu0 %v9353_v41 }
  0x9a   : > { %6214 = vmatprep.mubr.f32.mxu0 %v587_v31 }
  0x9d   : > { %6215 = vmatmul.mubr.f32.gmra.mrb[12].mxu0 %v597_v2 }
  0x9e   : > { %6217 = vmatprep.mubr.f32.mxu0 %v607_v16 }
  0xa1   : > { %6218 = vmatmul.mubr.f32.gmra.mrb[14].mxu0 %v617_v10  ;;  %v3062_v10 = vand.u32 4294901760, %v8126_v34 }
  0xa2   : > { %6228 = vmatprep.mubr.f32.mxu0 %v7763_v32 }
  0xa5   : > { %6229 = vmatmul.mubr.f32.vlgmr.msra.gmra.mrb[0].mxu0 %v7765_v35 }
  0xa6   : > { %6903 = vmatpush3.bf16.msra.mxu0 %v7711_v8  ;;  %6231 = vmatprep.mubr.f32.mxu0 %v7769_v37 }
  0xa7   : > { %6905 = vmatprep.subr.bf16.mxu0 %v7721_v12 }
  0xa9   : > { %6232 = vmatmul.mubr.f32.gmra.mrb[2].mxu0 %v7782_v44 }
  0xaa   : > { %6234 = vmatprep.mubr.f32.mxu0 %v7788_v47  ;;  %6907 = vmatpush3.bf16.msra.mxu0 %v7721_v12 }
  0xab   : > { %6957 = vmatprep.subr.bf16.mxu0 %v7711_v8 }
  0xad   : > { %6235 = vmatmul.mubr.f32.gmra.mrb[4].mxu0 %v7790_v48 }
  0xae   : > { %6237 = vmatprep.mubr.f32.mxu0 %v7799_v53 }
  0xb1   : > { %6238 = vmatmul.mubr.f32.gmra.mrb[6].mxu0 %v7824_v1 }
  0xb2   : > { %6240 = vmatprep.mubr.f32.mxu0 %v7852_v30 }
  0xb5   : > { %6241 = vmatmul.mubr.f32.gmra.mrb[8].mxu0 %v7867_v45 }
  0xb6   : > { %6243 = vmatprep.mubr.f32.mxu0 %v7869_v49 }
  0xb9   : > { %6244 = vmatmul.mubr.f32.gmra.mrb[10].mxu0 %v7886_v14 }
  0xba   : > { %6246 = vmatprep.mubr.f32.mxu0 %v7888_v15 }
  0xbd   : > { %6247 = vmatmul.mubr.f32.gmra.mrb[12].mxu0 %v7890_v19 }
  0xbe   : > { %6249 = vmatprep.mubr.f32.mxu0 %v7899_v27 }
  0xc1   : > { %6250 = vmatmul.mubr.f32.gmra.mrb[14].mxu0 %v7923_v23 }
  0xc2   : > { %6260 = vmatprep.mubr.f32.mxu0 %v7763_v32  ;;  %v2887_v32 = vld [vmem:[%s8058_s14] sm:$0xff] }
  0xc3   : > { %v2904_v43 = vsel %vm347_vm0, %v2887_v32, 0  ;;  %v8167_v32 = vand.u32 4294901760, %v2931_v36 }
  0xc5   : > { %6261 = vmatmul.mubr.f32.vlgmr.msra.gmra.mrb[0].mxu0 %v7765_v35  ;;  %v2888_v35 = vld [vmem:[%s8058_s14 + $0x8] sm:$0xff] }
  0xc6   : > { %6959 = vmatpush3.bf16.msra.mxu0 %v7711_v8  ;;  %6263 = vmatprep.mubr.f32.mxu0 %v7769_v37  ;;  %v8074_v37 = vand.u32 4294901760, %v2904_v43 }
  0xc7   : > { %6961 = vmatprep.subr.bf16.mxu0 %v7721_v12 }
  0xc8   : > { %v8085_v54 = vsub.f32 %v2904_v43, %v8074_v37 }
  0xc9   : > { %6264 = vmatmul.mubr.f32.gmra.mrb[2].mxu0 %v7782_v44  ;;  %v2907_v44 = vsel %vm347_vm0, %v2888_v35, 0  ;;  %v3063_v35 = vsub.f32 %v8126_v34, %v3062_v10 }
  0xca   : > { %6266 = vmatprep.mubr.f32.mxu0 %v7788_v47  ;;  %6963 = vmatpush3.bf16.msra.mxu0 %v7721_v12  ;;  %v2910_v47 = vsel %vm347_vm0, %v2889_v46, 0  ;;  %v8081_v52 = vand.u32 4294901760, %v2907_v44  ;;  %v3022_v6 = vand.u32 4294901760, %v8085_v54 }
  0xcb   : > { %6965 = vmatprep.subr.bf16.mxu0 %v7777_v42 }
  0xcc   : > { %v8095_v61 = vsub.f32 %v2907_v44, %v8081_v52  ;;  %v3023_v25 = vsub.f32 %v8085_v54, %v3022_v6 }
  0xcd   : > { %6267 = vmatmul.mubr.f32.gmra.mrb[4].mxu0 %v7790_v48  ;;  %v8087_v48 = vand.u32 4294901760, %v2910_v47 }
  0xce   : > { %6269 = vmatprep.mubr.f32.mxu0 %v7799_v53  ;;  %v2913_v53 = vsel %vm347_vm0, %v2890_v50, 0  ;;  %v3032_v4 = vand.u32 4294901760, %v8095_v61  ;;  %v3024_v17 = vand.u32 4294901760, %v3023_v25 }
  0xcf   : > { %v8097_v63 = vand.u32 4294901760, %v2913_v53  ;;  %v8104_v18 = vsub.f32 %v2910_v47, %v8087_v48  ;;  %v2900_v47 = vld [vmem:[%s8058_s14 + $0x68] sm:$0xff] }
  0xd0   : > { %v3033_v2 = vsub.f32 %v8095_v61, %v3032_v4  ;;  %v2943_v25 = vsel %vm347_vm0, %v2900_v47, 0 }
  0xd1   : > { %6270 = vmatmul.mubr.f32.gmra.mrb[6].mxu0 %v7824_v1  ;;  %v2922_v1 = vsel %vm347_vm0, %v2893_v56, 0  ;;  %v3042_v33 = vand.u32 4294901760, %v8104_v18 }
  0xd2   : > { %6272 = vmatprep.mubr.f32.mxu0 %v7852_v30  ;;  %v2894_v30 = vld [vmem:[%s8058_s14 + $0x38] sm:$0xff]  ;;  %v8112_v3 = vand.u32 4294901760, %v2922_v1  ;;  %v3034_v11 = vand.u32 4294901760, %v3033_v2 }
  0xd3   : > { %v2925_v5 = vsel %vm347_vm0, %v2894_v30, 0  ;;  %v3043_v28 = vsub.f32 %v8104_v18, %v3042_v33  ;;  %v3064_v30 = vand.u32 4294901760, %v3063_v35 }
  0xd4   : > { %v8134_v31 = vsub.f32 %v2922_v1, %v8112_v3 }
  0xd5   : > { %6273 = vmatmul.mubr.f32.gmra.mrb[8].mxu0 %v7867_v45  ;;  %v8110_v45 = vand.u32 4294901760, %v2919_v0  ;;  %v3044_v43 = vand.u32 4294901760, %v3043_v28 }
  0xd6   : > { %6275 = vmatprep.mubr.f32.mxu0 %v7869_v49  ;;  %v8117_v49 = vsub.f32 %v2913_v53, %v8097_v63  ;;  %v3082_v21 = vand.u32 4294901760, %v8134_v31 }
  0xd7   : > { %v8131_v57 = vsub.f32 %v2919_v0, %v8110_v45  ;;  %v8187_v0 = vsub.f32 %v2931_v36, %v8167_v32 }
  0xd8   : > { %v3052_v20 = vand.u32 4294901760, %v8117_v49  ;;  %v3083_v51 = vsub.f32 %v8134_v31, %v3082_v21 }
  0xd9   : > { %6276 = vmatmul.mubr.f32.gmra.mrb[10].mxu0 %v7886_v14  ;;  %v2928_v14 = vsel %vm347_vm0, %v2895_v40, 0  ;;  %v3072_v38 = vand.u32 4294901760, %v8131_v57  ;;  %v3112_v28 = vand.u32 4294901760, %v8187_v0 }
  0xda   : > { %6278 = vmatprep.mubr.f32.mxu0 %v7888_v15  ;;  %v8136_v15 = vand.u32 4294901760, %v2925_v5  ;;  %v8144_v16 = vand.u32 4294901760, %v2928_v14  ;;  %v3053_v13 = vsub.f32 %v8117_v49, %v3052_v20  ;;  %v3084_v2 = vand.u32 4294901760, %v3083_v51 }
  0xdb   : > { %v3073_v50 = vsub.f32 %v8131_v57, %v3072_v38  ;;  %v3113_v35 = vsub.f32 %v8187_v0, %v3112_v28 }
  0xdc   : > { %v8157_v62 = vsub.f32 %v2925_v5, %v8136_v15  ;;  %v8165_v41 = vsub.f32 %v2928_v14, %v8144_v16  ;;  %v3054_v56 = vand.u32 4294901760, %v3053_v13  ;;  %v2946_v14 = vsel %vm347_vm0, %v2901_v55, 0 }
  0xdd   : > { %6279 = vmatmul.mubr.f32.gmra.mrb[12].mxu0 %v7890_v19  ;;  %v2934_v19 = vsel %vm347_vm0, %v2897_v59, 0  ;;  %v3074_v59 = vand.u32 4294901760, %v3073_v50  ;;  %v2949_v13 = vsel %vm347_vm0, %v2902_v39, 0 }
  0xde   : > { %6281 = vmatprep.mubr.f32.mxu0 %v7899_v27  ;;  %v2899_v27 = vld [vmem:[%s8058_s14 + $0x60] sm:$0xff]  ;;  %v8172_v46 = vand.u32 4294901760, %v2934_v19  ;;  %v3092_v53 = vand.u32 4294901760, %v8157_v62  ;;  %v3102_v60 = vand.u32 4294901760, %v8165_v41  ;;  %v8229_v47 = vand.u32 4294901760, %v2949_v13  ;;  %s5522_s14 = sshll.u32 %s9368_s19, 2 }
  0xdf   : > { %v2940_v44 = vsel %vm347_vm0, %v2899_v27, 0  ;;  %s9212_s17 = scalar_lea.vmem %s9335_s6, %s5522_s14  ;;  %s294_s19 = sand.u32 1, %s7596_s25  }
  0xe0   : > { %v8193_v40 = vsub.f32 %v2934_v19, %v8172_v46  ;;  %v8195_v5 = vand.u32 4294901760, %v2940_v44  ;;  %v8211_v19 = vand.u32 4294901760, %v2943_v25  ;;  %v8243_v39 = vsub.f32 %v2949_v13, %v8229_v47  ;;  %s5516_s18 = sshll.u32 %s294_s19, 4  ;;  %s9288_s9 = scalar_lea.sflag [#allocation3], %s294_s19 }
  0xe1   : > { %6282 = vmatmul.mubr.f32.gmra.mrb[14].mxu0 %v7923_v23  ;;  %v2937_v23 = vsel %vm347_vm0, %v2898_v9, 0  ;;  %s296_s20 = scalar_lea.vmem [#allocation2], %s5516_s18  ;;  %s7546_s14 = sshll.u32 %s7606_s28, 4  ;;  %s7547_s14 = int_to_ptr.vmem [resolvable:$false] %s7546_s14 }
  0xe2   : > { %6484 = vmatprep.mubr.f32.mxu0 %v3024_v17  ;;  %v8189_v1 = vand.u32 4294901760, %v2937_v23  ;;  %v3103_v17 = vsub.f32 %v8165_v41, %v3102_v60  ;;  %v3122_v9 = vand.u32 4294901760, %v8193_v40  ;;  %v8216_v27 = vsub.f32 %v2940_v44, %v8195_v5  ;;  %s5413_s21 = sshll.u32 %s296_s20, 4  ;;  %s7548_s15 = scalar_lea.vmem %s7547_s14, 512  ;;  %s9281_s21 = int_to_ptr.vmem [resolvable:$true] %s5413_s21 }
  0xe3   : > { %s7542_s13 = scalar_lea.vmem %s9281_s21, 256  ;;  %p7549_p0 = scmp.lt.s32.totalorder %s9281_s21, %s7547_s14 }
  0xe4   : > { %v8209_v36 = vsub.f32 %v2937_v23, %v8189_v1  ;;  %v3104_v44 = vand.u32 4294901760, %v3103_v17  ;;  %v3123_v50 = vsub.f32 %v8193_v40, %v3122_v9  ;;  %v3142_v51 = vand.u32 4294901760, %v8216_v27  ;;  %p7543_p11 = scmp.ne.s32.totalorder %s9281_s21, %s7542_s13  ;;  %p7550_p1 = scmp.lt.s32.totalorder %s7548_s15, %s7542_s13 }
  0xe5   : > { %6485 = vmatmul.mubr.f32.vlgmr.msra.gmra.mrb[16].mxu0 %v3034_v11  ;;  %v8218_v11 = vand.u32 4294901760, %v2946_v14 }
  0xe6   : > { %6967 = vmatpush3.bf16.msra.mxu0 %v7777_v42  ;;  %6487 = vmatprep.mubr.f32.mxu0 %v3044_v43  ;;  %v3093_v42 = vsub.f32 %v8157_v62, %v3092_v53  ;;  %v3132_v23 = vand.u32 4294901760, %v8209_v36  ;;  %p7544_p12 = pnand %p7543_p11, %p7688_p5  ;;  %p7551_p2 = por %p7550_p1, %p7549_p0 }
  0xe7   : > { %6969 = vmatprep.subr.bf16.mxu0 %v7872_v58  ;;  %v8236_v55 = vsub.f32 %v2946_v14, %v8218_v11 }
  0xe8   : > { %v3094_v43 = vand.u32 4294901760, %v3093_v42  ;;  %p7545_p13 = pneg %p7544_p12 }
  0xe9   : > { %6488 = vmatmul.mubr.f32.gmra.mrb[18].mxu0 %v3054_v56  ;;  %v3114_v56 = vand.u32 4294901760, %v3113_v35  ;;  %v3162_v14 = vand.u32 4294901760, %v8236_v55 }
  0xea   : > { %6490 = vmatprep.mubr.f32.mxu0 %v3064_v30  ;;  %6971 = vmatpush3.bf16.msra.mxu0 %v7872_v58  ;;  %v8227_v58 = vsub.f32 %v2943_v25, %v8211_v19  ;;  %v3133_v30 = vsub.f32 %v8209_v36, %v3132_v23  ;;  %p7552_p3 = pnand %p7551_p2, %p7545_p13 }
  0xeb   : > { %6973 = vmatprep.subr.bf16.mxu0 %v7846_v26  ;;  %v3163_v13 = vsub.f32 %v8236_v55, %v3162_v14 }
  0xec   : > { %v3152_v25 = vand.u32 4294901760, %v8227_v58  ;;  %v3134_v42 = vand.u32 4294901760, %v3133_v30 }
  0xed   : > { %6491 = vmatmul.mubr.f32.gmra.mrb[20].mxu0 %v3074_v59  ;;  %v3124_v59 = vand.u32 4294901760, %v3123_v50 }
  0xee   : > { %6493 = vmatprep.mubr.f32.mxu0 %v3084_v2  ;;  %v3143_v2 = vsub.f32 %v8216_v27, %v3142_v51  ;;  %v3153_v17 = vsub.f32 %v8227_v58, %v3152_v25 }
  0xf0   : > { %v3144_v35 = vand.u32 4294901760, %v3143_v2 }
  0xf1   : > { %6494 = vmatmul.mubr.f32.gmra.mrb[22].mxu0 %v3094_v43  ;;  %v3172_v43 = vand.u32 4294901760, %v8243_v39 }
  0xf2   : > { %6496 = vmatprep.mubr.f32.mxu0 %v3104_v44  ;;  %v3154_v44 = vand.u32 4294901760, %v3153_v17  ;;  %v322_v17 = vld [vmem:[%s9333_s4 + $0x10] sm:$0xff] }
  0xf3   : > { %v3173_v50 = vsub.f32 %v8243_v39, %v3172_v43 }
  0xf5   : > { %6497 = vmatmul.mubr.f32.gmra.mrb[24].mxu0 %v3114_v56  ;;  %v3164_v56 = vand.u32 4294901760, %v3163_v13  ;;  %v3174_v30 = vand.u32 4294901760, %v3173_v50  ;;  %v1667_v13 = vand.u32 4294901760, %v322_v17 }
  0xf6   : > { %6499 = vmatprep.mubr.f32.mxu0 %v3124_v59 }
  0xf9   : > { %6500 = vmatmul.mubr.f32.gmra.mrb[26].mxu0 %v3134_v42 }
  0xfa   : > { %6502 = vmatprep.mubr.f32.mxu0 %v3144_v35  ;;  %v323_v35 = vld [vmem:[%s9333_s4 + $0x18] sm:$0xff] }
  0xfd   : > { %6503 = vmatmul.mubr.f32.gmra.mrb[28].mxu0 %v3154_v44  ;;  %v1670_v44 = vand.u32 4294901760, %v323_v35 }
  0xfe   : > { %6505 = vmatprep.mubr.f32.mxu0 %v3164_v56 }
  0xff   : > { %v8308_v50 = vpack.c.bf16 %v1670_v44, %v1667_v13 }
 0x101   : > { %6506 = vmatmul.mubr.f32.gmra.mrb[30].mxu0 %v3174_v30 }
 0x102   : > { %6516 = vmatprep.mubr.f32.mxu0 %v8074_v37 }
 0x105   : > { %6517 = vmatmul.mubr.f32.vlgmr.msra.gmra.mrb[16].mxu0 %v8081_v52 }
 0x106   : > { %6975 = vmatpush3.bf16.msra.mxu0 %v7846_v26  ;;  %6519 = vmatprep.mubr.f32.mxu0 %v8087_v48  ;;  %v320_v26 = vld [vmem:[%s9333_s4] sm:$0xff] }
 0x107   : > { %6977 = vmatprep.subr.bf16.mxu0 %v7955_v22  ;;  %v1661_v59 = vand.u32 4294901760, %v320_v26 }
 0x109   : > { %6520 = vmatmul.mubr.f32.gmra.mrb[18].mxu0 %v8097_v63 }
 0x10a   : > { %6522 = vmatprep.mubr.f32.mxu0 %v8106_v29  ;;  %6979 = vmatpush3.bf16.msra.mxu0 %v7955_v22  ;;  %v321_v22 = vld [vmem:[%s9333_s4 + $0x8] sm:$0xff] }
 0x10b   : > { %6981 = vmatprep.subr.bf16.mxu0 %v7711_v8  ;;  %v1664_v2 = vand.u32 4294901760, %v321_v22 }
 0x10d   : > { %6523 = vmatmul.mubr.f32.gmra.mrb[20].mxu0 %v8110_v45  ;;  %v8296_v42 = vpack.c.bf16 %v1664_v2, %v1661_v59 }
 0x10e   : > { %6525 = vmatprep.mubr.f32.mxu0 %v8112_v3 }
 0x10f   : > { %6909 = vmatprep.subr.bf16.mxu1 %v8296_v42 }
 0x110   : > { %6911 = vmatpush3.bf16.msra.mxu1 %v8296_v42 }
 0x111   : > { %6526 = vmatmul.mubr.f32.gmra.mrb[22].mxu0 %v8136_v15  ;;  %6913 = vmatprep.subr.bf16.mxu1 %v8308_v50 }
 0x112   : > { %6528 = vmatprep.mubr.f32.mxu0 %v8144_v16 }
 0x114   : > { %6915 = vmatpush3.bf16.msra.mxu1 %v8308_v50 }
 0x115   : > { %6529 = vmatmul.mubr.f32.gmra.mrb[24].mxu0 %v8167_v32 }
 0x116   : > { %6531 = vmatprep.mubr.f32.mxu0 %v8172_v46 }
 0x119   : > { %6532 = vmatmul.mubr.f32.gmra.mrb[26].mxu0 %v8189_v1 }
 0x11a   : > { %6534 = vmatprep.mubr.f32.mxu0 %v8195_v5 }
 0x11d   : > { %6535 = vmatmul.mubr.f32.gmra.mrb[28].mxu0 %v8211_v19 }
 0x11e   : > { %6537 = vmatprep.mubr.f32.mxu0 %v8218_v11 }
 0x121   : > { %6538 = vmatmul.mubr.f32.gmra.mrb[30].mxu0 %v8229_v47 }
 0x122   : > { %6548 = vmatprep.mubr.f32.mxu0 %v8085_v54  ;;  %v8339_v54 = vsub.f32 %v321_v22, %v1664_v2 }
 0x125   : > { %6549 = vmatmul.mubr.f32.vlgmr.msra.gmra.mrb[16].mxu0 %v8095_v61  ;;  %v1899_v61 = vand.u32 4294901760, %v8339_v54 }
 0x126   : > { %6983 = vmatpush3.bf16.msra.mxu0 %v7711_v8  ;;  %6551 = vmatprep.mubr.f32.mxu0 %v8104_v18  ;;  %v8349_v18 = vsub.f32 %v323_v35, %v1670_v44 }
 0x127   : > { %6985 = vmatprep.subr.bf16.mxu0 %v7721_v12 }
 0x129   : > { %6552 = vmatmul.mubr.f32.gmra.mrb[18].mxu0 %v8117_v49  ;;  %v1900_v49 = vsub.f32 %v8339_v54, %v1899_v61 }
 0x12a   : > { %6554 = vmatprep.mubr.f32.mxu0 %v8126_v34  ;;  %6987 = vmatpush3.bf16.msra.mxu0 %v7721_v12  ;;  %v1913_v34 = vand.u32 4294901760, %v8349_v18 }
 0x12b   : > { %6989 = vmatprep.subr.bf16.mxu0 %v7750_v24 }
 0x12d   : > { %6555 = vmatmul.mubr.f32.gmra.mrb[20].mxu0 %v8131_v57 }
 0x12e   : > { %6557 = vmatprep.mubr.f32.mxu0 %v8134_v31  ;;  %v1901_v31 = vand.u32 4294901760, %v1900_v49 }
 0x131   : > { %6558 = vmatmul.mubr.f32.gmra.mrb[22].mxu0 %v8157_v62 }
 0x132   : > { %6560 = vmatprep.mubr.f32.mxu0 %v8165_v41 }
 0x135   : > { %6561 = vmatmul.mubr.f32.gmra.mrb[24].mxu0 %v8187_v0 }
 0x136   : > { %6563 = vmatprep.mubr.f32.mxu0 %v8193_v40 }
 0x139   : > { %6564 = vmatmul.mubr.f32.gmra.mrb[26].mxu0 %v8209_v36 }
 0x13a   : > { %6566 = vmatprep.mubr.f32.mxu0 %v8216_v27 }
 0x13d   : > { %6567 = vmatmul.mubr.f32.gmra.mrb[28].mxu0 %v8227_v58 }
 0x13e   : > { %6569 = vmatprep.mubr.f32.mxu0 %v8236_v55 }
 0x141   : > { %6570 = vmatmul.mubr.f32.gmra.mrb[30].mxu0 %v8243_v39 }
 0x142   : > { %6580 = vmatprep.mubr.f32.mxu0 %v3022_v6  ;;  %v8347_v6 = vsub.f32 %v322_v17, %v1667_v13 }
 0x145   : > { %6581 = vmatmul.mubr.f32.vlgmr.msra.gmra.mrb[16].mxu0 %v3032_v4 }
 0x146   : > { %6991 = vmatpush3.bf16.msra.mxu0 %v7750_v24  ;;  %6583 = vmatprep.mubr.f32.mxu0 %v3042_v33  ;;  %v8337_v24 = vsub.f32 %v320_v26, %v1661_v59  ;;  %v1906_v33 = vand.u32 4294901760, %v8347_v6 }
 0x147   : > { %6993 = vmatprep.subr.bf16.mxu0 %v7929_v7 }
 0x149   : > { %6584 = vmatmul.mubr.f32.gmra.mrb[18].mxu0 %v3052_v20  ;;  %v1907_v20 = vsub.f32 %v8347_v6, %v1906_v33 }
 0x14a   : > { %6586 = vmatprep.mubr.f32.mxu0 %v3062_v10  ;;  %6995 = vmatpush3.bf16.msra.mxu0 %v7929_v7  ;;  %v1892_v7 = vand.u32 4294901760, %v8337_v24  ;;  %v1914_v10 = vsub.f32 %v8349_v18, %v1913_v34 }
 0x14b   : > { %6997 = vmatprep.subr.bf16.mxu0 %v7711_v8 }
 0x14c   : > { %v1893_v4 = vsub.f32 %v8337_v24, %v1892_v7  ;;  %v1915_v62 = vand.u32 4294901760, %v1914_v10 }
 0x14d   : > { %6587 = vmatmul.mubr.f32.gmra.mrb[20].mxu0 %v3072_v38 }
 0x14e   : > { %6589 = vmatprep.mubr.f32.mxu0 %v3082_v21  ;;  %v1894_v57 = vand.u32 4294901760, %v1893_v4  ;;  %v1908_v21 = vand.u32 4294901760, %v1907_v20 }
 0x150   : > { %v8369_v38 = vpack.c.bf16 %v1901_v31, %v1894_v57  ;;  %v8376_v41 = vpack.c.bf16 %v1915_v62, %v1908_v21 }
 0x151   : > { %6590 = vmatmul.mubr.f32.gmra.mrb[22].mxu0 %v3092_v53  ;;  %v8387_v53 = vpack.c.bf16 %v8339_v54, %v8337_v24  ;;  %v8753_v24 = vpack.c.bf16 %v1913_v34, %v1906_v33 }
 0x152   : > { %6592 = vmatprep.mubr.f32.mxu0 %v3102_v60  ;;  %6917 = vmatprep.subr.bf16.mxu1 %v8369_v38 }
 0x155   : > { %6593 = vmatmul.mubr.f32.gmra.mrb[24].mxu0 %v3112_v28 }
 0x156   : > { %6595 = vmatprep.mubr.f32.mxu0 %v3122_v9 }
 0x159   : > { %6596 = vmatmul.mubr.f32.gmra.mrb[26].mxu0 %v3132_v23 }
 0x15a   : > { %6598 = vmatprep.mubr.f32.mxu0 %v3142_v51 }
 0x15d   : > { %6599 = vmatmul.mubr.f32.gmra.mrb[28].mxu0 %v3152_v25 }
 0x15e   : > { %6601 = vmatprep.mubr.f32.mxu0 %v3162_v14 }
 0x161   : > { %6602 = vmatmul.mubr.f32.gmra.mrb[30].mxu0 %v3172_v43 }
 0x162   : > { %6612 = vmatprep.mubr.f32.mxu0 %v8074_v37 }
 0x165   : > { %6613 = vmatmul.mubr.f32.vlgmr.msra.gmra.mrb[16].mxu0 %v8081_v52 }
 0x166   : > { %6999 = vmatpush3.bf16.msra.mxu0 %v7711_v8  ;;  %6615 = vmatprep.mubr.f32.mxu0 %v8087_v48  ;;  %v8402_v8 = vpack.c.bf16 %v8349_v18, %v8347_v6 }
 0x167   : > { %7001 = vmatprep.subr.bf16.mxu0 %v7721_v12 }
 0x169   : > { %6616 = vmatmul.mubr.f32.gmra.mrb[18].mxu0 %v8097_v63 }
 0x16a   : > { %6618 = vmatprep.mubr.f32.mxu0 %v8106_v29  ;;  %7003 = vmatpush3.bf16.msra.mxu0 %v7721_v12  ;;  %v8424_v12 = vld [vmem:[%s9332_s3] ss:$0 sm:$0xff] }
 0x16d   : > { %6619 = vmatmul.mubr.f32.gmra.mrb[20].mxu0 %v8110_v45 }
 0x16e   : > { %6621 = vmatprep.mubr.f32.mxu0 %v8112_v3 }
 0x171   : > { %6622 = vmatmul.mubr.f32.gmra.mrb[22].mxu0 %v8136_v15 }
 0x172   : > { %6624 = vmatprep.mubr.f32.mxu0 %v8144_v16 }
 0x175   : > { %6625 = vmatmul.mubr.f32.gmra.mrb[24].mxu0 %v8167_v32 }
 0x176   : > { %6627 = vmatprep.mubr.f32.mxu0 %v8172_v46 }
 0x179   : > { %6628 = vmatmul.mubr.f32.gmra.mrb[26].mxu0 %v8189_v1 }
 0x17a   : > { %6630 = vmatprep.mubr.f32.mxu0 %v8195_v5 }
 0x17d   : > { %6631 = vmatmul.mubr.f32.gmra.mrb[28].mxu0 %v8211_v19 }
 0x17e   : > { %6633 = vmatprep.mubr.f32.mxu0 %v8218_v11 }
 0x181   : > { %6634 = vmatmul.mubr.f32.gmra.mrb[30].mxu0 %v8229_v47 }
 0x182   : > { %6644 = vmatprep.mubr.f32.mxu0 %v8074_v37 }
 0x185   : > { %6645 = vmatmul.mubr.f32.vlgmr.msra.gmra.mrb[16].mxu0 %v8081_v52 }
 0x186   : > { %6647 = vmatprep.mubr.f32.mxu0 %v8087_v48 }
 0x189   : > { %6648 = vmatmul.mubr.f32.gmra.mrb[18].mxu0 %v8097_v63 }
 0x18a   : > { %6650 = vmatprep.mubr.f32.mxu0 %v8106_v29 }
 0x18d   : > { %6651 = vmatmul.mubr.f32.gmra.mrb[20].mxu0 %v8110_v45 }
 0x18e   : > { %6653 = vmatprep.mubr.f32.mxu0 %v8112_v3 }
 0x191   : > { %6654 = vmatmul.mubr.f32.gmra.mrb[22].mxu0 %v8136_v15 }
 0x192   : > { %6656 = vmatprep.mubr.f32.mxu0 %v8144_v16 }
 0x195   : > { %6657 = vmatmul.mubr.f32.gmra.mrb[24].mxu0 %v8167_v32 }
 0x196   : > { %6659 = vmatprep.mubr.f32.mxu0 %v8172_v46 }
 0x198   : > { %v6262_v37 = vpop.f32.mrb[0].mxu0 }
 0x199   : > { %v7052_v52 = vadd.f32 %v6262_v37, %v8424_v12  ;;  %v1432_v48 = vpop.f32.mrb[1].mxu0  ;;  %6660 = vmatmul.mubr.f32.gmra.mrb[26].mxu0 %v8189_v1 }
 0x19a   : > { %v8430_v63 = vadd.f32 %v8424_v12, %v1432_v48  ;;  %6662 = vmatprep.mubr.f32.mxu0 %v8195_v5 }
 0x19b   : > { %v1544_v29 = vmul.f32 1.442695, %v7052_v52  ;;  %vm1527_vm1 = vcmp.gt.f32.partialorder %v7052_v52, 0.0 }
 0x19c   : > { %v1542_v45 = vmul.f32 1.442695, %v8430_v63  ;;  %v6265_v3 = vpop.f32.mrb[2].mxu0  ;;  %vm1526_vm2 = vcmp.gt.f32.partialorder %v8430_v63, 0.0 }
 0x19d   : > { %7478 = vpow2.f32 %v1544_v29  ;;  %v7054_v15 = vadd.f32 %v6265_v3, %v8424_v12  ;;  %v1444_v16 = vpop.f32.mrb[3].mxu0  ;;  %6663 = vmatmul.mubr.f32.gmra.mrb[28].mxu0 %v8211_v19 }
 0x19e   : > { %v7055_v32 = vadd.f32 %v8424_v12, %v1444_v16  ;;  %6665 = vmatprep.mubr.f32.mxu0 %v8218_v11  ;;  %7480 = vpow2.f32 %v1542_v45 }
 0x19f   : > { %v1548_v46 = vmul.f32 1.442695, %v7054_v15  ;;  %vm1529_vm3 = vcmp.gt.f32.partialorder %v7054_v15, 0.0 }
 0x1a0   : > { %v1546_v60 = vmul.f32 1.442695, %v7055_v32  ;;  %v6268_v0 = vpop.f32.mrb[4].mxu0  ;;  %vm1528_vm4 = vcmp.gt.f32.partialorder %v7055_v32, 0.0 }
 0x1a1   : > { %7482 = vpow2.f32 %v1548_v46  ;;  %v8439_v1 = vadd.f32 %v6268_v0, %v8424_v12  ;;  %v1456_v40 = vpop.f32.mrb[5].mxu0  ;;  %6666 = vmatmul.mubr.f32.gmra.mrb[30].mxu0 %v8229_v47 }
 0x1a2   : > { %7484 = vpow2.f32 %v1546_v60  ;;  %v8443_v5 = vadd.f32 %v8424_v12, %v1456_v40 }
 0x1a3   : > { %v1552_v28 = vmul.f32 1.442695, %v8439_v1  ;;  %vm1531_vm5 = vcmp.gt.f32.partialorder %v8439_v1, 0.0 }
 0x1a4   : > { %v1550_v36 = vmul.f32 1.442695, %v8443_v5  ;;  %v6271_v19 = vpop.f32.mrb[6].mxu0  ;;  %vm1530_vm6 = vcmp.gt.f32.partialorder %v8443_v5, 0.0 }
 0x1a5   : > { %7486 = vpow2.f32 %v1552_v28  ;;  %v8448_v9 = vadd.f32 %v6271_v19, %v8424_v12  ;;  %v1468_v27 = vpop.f32.mrb[7].mxu0 }
 0x1a6   : > { %7488 = vpow2.f32 %v1550_v36  ;;  %v8451_v11 = vadd.f32 %v8424_v12, %v1468_v27 }
 0x1a7   : > { %v7479_v23 = vpop.eup %7478  ;;  %v1556_v58 = vmul.f32 1.442695, %v8448_v9  ;;  %vm1533_vm7 = vcmp.gt.f32.partialorder %v8448_v9, 0.0 }
 0x1a8   : > { %v5525_v47 = vadd.f32 -1.0, %v7479_v23  ;;  %v1554_v51 = vmul.f32 1.442695, %v8451_v11  ;;  %v6274_v55 = vpop.f32.mrb[8].mxu0  ;;  %v7481_v25 = vpop.eup %7480  ;;  %vm1532_vm8 = vcmp.gt.f32.partialorder %v8451_v11, 0.0 }
 0x1a9   : > { %7490 = vpow2.f32 %v1556_v58  ;;  %v8456_v39 = vadd.f32 %v6274_v55, %v8424_v12  ;;  %v1480_v14 = vpop.f32.mrb[9].mxu0  ;;  %v5524_v59 = vadd.f32 -1.0, %v7481_v25 }
 0x1aa   : > { %v1591_v43 = vsel %vm1527_vm1, %v7052_v52, %v5525_v47  ;;  %7492 = vpow2.f32 %v1554_v51  ;;  %v8459_v56 = vadd.f32 %v8424_v12, %v1480_v14 }
 0x1ab   : > { %v7483_v30 = vpop.eup %7482  ;;  %v1560_v26 = vmul.f32 1.442695, %v8456_v39  ;;  %v1616_v13 = vsel %vm347_vm0, %v1591_v43, 0  ;;  %v1590_v52 = vsel %vm1526_vm2, %v8430_v63, %v5524_v59  ;;  %vm1535_vm9 = vcmp.gt.f32.partialorder %v8456_v39, 0.0 }
 0x1ac   : > { %v7485_v22 = vpop.eup %7484  ;;  %v5527_v2 = vadd.f32 -1.0, %v7483_v30  ;;  %v1558_v17 = vmul.f32 1.442695, %v8459_v56  ;;  %v6277_v35 = vpop.f32.mrb[10].mxu0  ;;  %v8475_v37 = vand.u32 4294901760, %v1616_v13  ;;  %vm1534_vm10 = vcmp.gt.f32.partialorder %v8459_v56, 0.0 }
 0x1ad   : > { %v5526_v44 = vadd.f32 -1.0, %v7485_v22  ;;  %7494 = vpow2.f32 %v1560_v26  ;;  %v8466_v4 = vadd.f32 %v6277_v35, %v8424_v12  ;;  %v1492_v49 = vpop.f32.mrb[11].mxu0  ;;  %v1613_v28 = vsel %vm347_vm0, %v1590_v52, 0 }
 0x1ae   : > { %v1593_v57 = vsel %vm1529_vm3, %v7054_v15, %v5527_v2  ;;  %7496 = vpow2.f32 %v1558_v17  ;;  %v8470_v31 = vadd.f32 %v8424_v12, %v1492_v49  ;;  %v8500_v19 = vsub.f32 %v1616_v13, %v8475_v37 }
 0x1af   : > { %v7487_v20 = vpop.eup %7486  ;;  %v1592_v10 = vsel %vm1528_vm4, %v7055_v32, %v5526_v44  ;;  %v1564_v21 = vmul.f32 1.442695, %v8466_v4  ;;  %v1622_v45 = vsel %vm347_vm0, %v1593_v57, 0  ;;  %vm1537_vm11 = vcmp.gt.f32.partialorder %v8466_v4, 0.0 }
 0x1b0   : > { %v7489_v62 = vpop.eup %7488  ;;  %v5529_v48 = vadd.f32 -1.0, %v7487_v20  ;;  %v6280_v29 = vpop.f32.mrb[12].mxu0  ;;  %v1562_v15 = vmul.f32 1.442695, %v8470_v31  ;;  %v1619_v32 = vsel %vm347_vm0, %v1592_v10, 0  ;;  %vm1536_vm12 = vcmp.gt.f32.partialorder %v8470_v31, 0.0 }
 0x1b1   : > { %v5528_v3 = vadd.f32 -1.0, %v7489_v62  ;;  %7498 = vpow2.f32 %v1564_v21  ;;  %v1504_v16 = vpop.f32.mrb[13].mxu0  ;;  %v8489_v63 = vadd.f32 %v6280_v29, %v8424_v12  ;;  %v8505_v47 = vand.u32 4294901760, %v1619_v32 }
 0x1b2   : > { %v1595_v46 = vsel %vm1531_vm5, %v8439_v1, %v5529_v48  ;;  %v8492_v60 = vadd.f32 %v8424_v12, %v1504_v16  ;;  %7500 = vpow2.f32 %v1562_v15  ;;  %v8502_v1 = vand.u32 4294901760, %v1622_v45 }
 0x1b3   : > { %v7491_v0 = vpop.eup %7490  ;;  %v1594_v40 = vsel %vm1530_vm6, %v8443_v5, %v5528_v3  ;;  %v1628_v27 = vsel %vm347_vm0, %v1595_v46, 0  ;;  %v1568_v55 = vmul.f32 1.442695, %v8489_v63  ;;  %v8531_v49 = vsub.f32 %v1619_v32, %v8505_v47 }
 0x1b4   : > { %v7493_v36 = vpop.eup %7492  ;;  %v5531_v23 = vadd.f32 -1.0, %v7491_v0  ;;  %v6283_v58 = vpop.f32.mrb[14].mxu0  ;;  %v1625_v51 = vsel %vm347_vm0, %v1594_v40, 0  ;;  %v1566_v43 = vmul.f32 1.442695, %v8492_v60  ;;  %v8517_v22 = vand.u32 4294901760, %v1628_v27 }
 0x1b5   : > { %v5530_v5 = vadd.f32 -1.0, %v7493_v36  ;;  %v1516_v25 = vpop.f32.mrb[15].mxu0  ;;  %v8515_v30 = vadd.f32 %v6283_v58, %v8424_v12  ;;  %7502 = vpow2.f32 %v1568_v55  ;;  %v8524_v17 = vand.u32 4294901760, %v1625_v51 }
 0x1b6   : > { %v1597_v14 = vsel %vm1533_vm7, %v8448_v9, %v5531_v23  ;;  %7504 = vpow2.f32 %v1566_v43  ;;  %v8528_v44 = vsub.f32 %v1622_v45, %v8502_v1  ;;  %v8540_v21 = vadd.f32 %v8424_v12, %v1516_v25 }
 0x1b7   : > { %v7495_v26 = vpop.eup %7494  ;;  %v1634_v59 = vsel %vm347_vm0, %v1597_v14, 0  ;;  %v1596_v2 = vsel %vm1532_vm8, %v8451_v11, %v5530_v5  ;;  %v1572_v20 = vmul.f32 1.442695, %v8515_v30  ;;  %v8542_v62 = vand.u32 4294901760, %v1613_v28 }
 0x1b8   : > { %v7497_v9 = vpop.eup %7496  ;;  %v1631_v35 = vsel %vm347_vm0, %v1596_v2, 0  ;;  %v5533_v13 = vadd.f32 -1.0, %v7495_v26  ;;  %v8534_v11 = vand.u32 4294901760, %v1634_v59  ;;  %vm1539_vm13 = vcmp.gt.f32.partialorder %v8489_v63, 0.0 }
 0x1b9   : > { %v5532_v57 = vadd.f32 -1.0, %v7497_v9  ;;  %v8544_v48 = vand.u32 4294901760, %v1631_v35  ;;  %7506 = vpow2.f32 %v1572_v20  ;;  %v8551_v45 = vsub.f32 %v1628_v27, %v8517_v22 }
 0x1ba   : > { %v1599_v10 = vsel %vm1535_vm9, %v8456_v39, %v5533_v13  ;;  %v8554_v39 = vsub.f32 %v1625_v51, %v8524_v17  ;;  %vm1538_vm14 = vcmp.gt.f32.partialorder %v8492_v60, 0.0  ;;  %v1570_v46 = vmul.f32 1.442695, %v8540_v21 }
 0x1bb   : > { %v7499_v52 = vpop.eup %7498  ;;  %v1598_v29 = vsel %vm1534_vm10, %v8459_v56, %v5532_v57  ;;  %v1640_v32 = vsel %vm347_vm0, %v1599_v10, 0  ;;  %v8561_v56 = vsub.f32 %v1613_v28, %v8542_v62  ;;  %v1741_v0 = vand.u32 4294901760, %v8500_v19 }
 0x1bc   : > { %v1637_v3 = vsel %vm347_vm0, %v1598_v29, 0  ;;  %v5535_v15 = vadd.f32 -1.0, %v7499_v52  ;;  %v7501_v16 = vpop.eup %7500  ;;  %v8565_v40 = vsub.f32 %v1634_v59, %v8534_v11  ;;  %v1751_v23 = vand.u32 4294901760, %v8531_v49 }
 0x1bd   : > { %v8567_v36 = vand.u32 4294901760, %v1637_v3  ;;  %v5534_v27 = vadd.f32 -1.0, %v7501_v16  ;;  %v8571_v58 = vsub.f32 %v1631_v35, %v8544_v48  ;;  %7508 = vpow2.f32 %v1570_v46 }
 0x1be   : > { %v1601_v51 = vsel %vm1537_vm11, %v8466_v4, %v5535_v15  ;;  %v1731_v28 = vand.u32 4294901760, %v8561_v56  ;;  %v8577_v5 = vand.u32 4294901760, %v1640_v32  ;;  %v1742_v25 = vsub.f32 %v8500_v19, %v1741_v0 }
 0x1bf   : > { %v1600_v55 = vsel %vm1536_vm12, %v8470_v31, %v5534_v27  ;;  %v1752_v14 = vsub.f32 %v8531_v49, %v1751_v23  ;;  %v7503_v43 = vpop.eup %7502  ;;  %v1761_v59 = vand.u32 4294901760, %v8528_v44  ;;  %v9343_v2 = vand.u32 4294901760, %v8554_v39 }
 0x1c0   : > { %v1643_v4 = vsel %vm347_vm0, %v1600_v55, 0  ;;  %v1732_v26 = vsub.f32 %v8561_v56, %v1731_v28  ;;  %v7505_v31 = vpop.eup %7504  ;;  %v8595_v9 = vsub.f32 %v1637_v3, %v8567_v36  ;;  %v1646_v35 = vsel %vm347_vm0, %v1601_v51, 0 }
 0x1c1   : > { %v8598_v13 = vand.u32 4294901760, %v1643_v4  ;;  %v5537_v57 = vadd.f32 -1.0, %v7503_v43  ;;  %v5536_v20 = vadd.f32 -1.0, %v7505_v31  ;;  %v1743_v52 = vand.u32 4294901760, %v1742_v25 }
 0x1c2   : > { %v1733_v10 = vand.u32 4294901760, %v1732_v26  ;;  %v1753_v29 = vand.u32 4294901760, %v1752_v14  ;;  %v1762_v16 = vsub.f32 %v8528_v44, %v1761_v59  ;;  %v1772_v3 = vsub.f32 %v8554_v39, %v9343_v2 }
 0x1c3   : > { %v1603_v15 = vsel %vm1539_vm13, %v8489_v63, %v5537_v57  ;;  %v9341_v46 = vand.u32 4294901760, %v8551_v45  ;;  %v7507_v27 = vpop.eup %7506  ;;  %v8611_v51 = vsub.f32 %v1640_v32, %v8577_v5  ;;  %v1602_v55 = vsel %vm1538_vm14, %v8492_v60, %v5536_v20 }
 0x1c4   : > { %vm1541_vm15 = vcmp.gt.f32.partialorder %v8515_v30, 0.0  ;;  %6292 = vmatprep.mubr.f32.mxu1 %v1733_v10  ;;  %v9340_v63 = vand.u32 4294901760, %v8571_v58  ;;  %v8618_v25 = vand.u32 4294901760, %v1646_v35  ;;  %v8621_v14 = vsub.f32 %v1643_v4, %v8598_v13 }
 0x1c5   : > { %v1649_v43 = vsel %vm347_vm0, %v1602_v55, 0  ;;  %v5539_v26 = vadd.f32 -1.0, %v7507_v27  ;;  %6293 = vmatmul.mubr.f32.vlgmr.msra.gmra.mrb[0].mxu1 %v1743_v52  ;;  %v1652_v32 = vsel %vm347_vm0, %v1603_v15, 0  ;;  %v1773_v60 = vand.u32 4294901760, %v1772_v3 }
 0x1c6   : > { %v8625_v31 = vand.u32 4294901760, %v1649_v43  ;;  %6919 = vmatpush3.bf16.msra.mxu1 %v8369_v38  ;;  %6295 = vmatprep.mubr.f32.mxu1 %v1753_v29  ;;  %v1792_v57 = vsub.f32 %v8571_v58, %v9340_v63  ;;  %v1763_v20 = vand.u32 4294901760, %v1762_v16  ;;  %v1782_v4 = vsub.f32 %v8551_v45, %v9341_v46 }
 0x1c7   : > { %v9345_v10 = vand.u32 4294901760, %v8565_v40  ;;  %v9342_v52 = vand.u32 4294901760, %v8595_v9  ;;  %6921 = vmatprep.subr.bf16.mxu1 %v8376_v41  ;;  %v7509_v15 = vpop.eup %7508  ;;  %v1605_v29 = vsel %vm1541_vm15, %v8515_v30, %v5539_v26  ;;  %vm1540_vm1 = vcmp.gt.f32.partialorder %v8540_v21, 0.0 }
 0x1c8   : > { %v8642_v3 = vsub.f32 %v1646_v35, %v8618_v25  ;;  %v8644_v16 = vand.u32 4294901760, %v1652_v32  ;;  %v5538_v27 = vadd.f32 -1.0, %v7509_v15  ;;  %v9346_v55 = vand.u32 4294901760, %v8611_v51 }
 0x1c9   : > { %6296 = vmatmul.mubr.f32.gmra.mrb[2].mxu1 %v1763_v20  ;;  %v8648_v63 = vsub.f32 %v1649_v43, %v8625_v31  ;;  %v1793_v46 = vand.u32 4294901760, %v1792_v57  ;;  %v1812_v30 = vsub.f32 %v8595_v9, %v9342_v52  ;;  %v9344_v35 = vand.u32 4294901760, %v8621_v14 }
 0x1ca   : > { %6298 = vmatprep.mubr.f32.mxu1 %v1773_v60  ;;  %6923 = vmatpush3.bf16.msra.mxu1 %v8376_v41  ;;  %v1658_v26 = vsel %vm347_vm0, %v1605_v29, 0  ;;  %v1604_v15 = vsel %vm1540_vm1, %v8540_v21, %v5538_v27  ;;  %v1783_v20 = vand.u32 4294901760, %v1782_v4  ;;  %v1802_v43 = vsub.f32 %v8565_v40, %v9345_v10 }
 0x1cb   : > { %6925 = vmatprep.subr.bf16.mxu1 %v8387_v53  ;;  %v1655_v60 = vsel %vm347_vm0, %v1604_v15, 0  ;;  %v8663_v57 = vsub.f32 %v1652_v32, %v8644_v16  ;;  %v8667_v2 = vand.u32 4294901760, %v1658_v26  ;;  %v1813_v29 = vand.u32 4294901760, %v1812_v30 }
 0x1cc   : > { %v8665_v52 = vand.u32 4294901760, %v1655_v60  ;;  %v1832_v21 = vsub.f32 %v8621_v14, %v9344_v35  ;;  %v9347_v4 = vand.u32 4294901760, %v8648_v63  ;;  %v1803_v15 = vand.u32 4294901760, %v1802_v43 }
 0x1cd   : > { %6299 = vmatmul.mubr.f32.gmra.mrb[4].mxu1 %v1783_v20  ;;  %v1822_v32 = vsub.f32 %v8611_v51, %v9346_v55  ;;  %v9348_v20 = vand.u32 4294901760, %v8642_v3  ;;  %v8685_v10 = vsub.f32 %v1658_v26, %v8667_v2  ;;  %v1861_v55 = vand.u32 4294901760, %v8663_v57 }
 0x1ce   : > { %6301 = vmatprep.mubr.f32.mxu1 %v1793_v46  ;;  %v8674_v27 = vsub.f32 %v1655_v60, %v8665_v52  ;;  %v1833_v46 = vand.u32 4294901760, %v1832_v21  ;;  %v1852_v30 = vsub.f32 %v8648_v63, %v9347_v4  ;;  %v9354_v54 = vand.u32 4294901760, %v8554_v39 }
 0x1cf   : > { %v1823_v60 = vand.u32 4294901760, %v1822_v32  ;;  %v1842_v43 = vsub.f32 %v8642_v3, %v9348_v20  ;;  %v1862_v26 = vsub.f32 %v8663_v57, %v1861_v55  ;;  %v1881_v32 = vand.u32 4294901760, %v8685_v10 }
 0x1d0   : > { %v1871_v35 = vand.u32 4294901760, %v8674_v27  ;;  %v9357_v6 = vand.u32 4294901760, %v8565_v40  ;;  %v9358_v18 = vand.u32 4294901760, %v8595_v9  ;;  %v9359_v33 = vand.u32 4294901760, %v8611_v51 }
 0x1d1   : > { %6302 = vmatmul.mubr.f32.gmra.mrb[6].mxu1 %v1803_v15  ;;  %v1843_v15 = vand.u32 4294901760, %v1842_v43  ;;  %v1863_v20 = vand.u32 4294901760, %v1862_v26  ;;  %v9360_v34 = vand.u32 4294901760, %v8621_v14 }
 0x1d2   : > { %6304 = vmatprep.mubr.f32.mxu1 %v1813_v29  ;;  %v1853_v29 = vand.u32 4294901760, %v1852_v30  ;;  %v1872_v21 = vsub.f32 %v8674_v27, %v1871_v35 }
 0x1d4   : > { %v1873_v4 = vand.u32 4294901760, %v1872_v21 }
 0x1d5   : > { %6305 = vmatmul.mubr.f32.gmra.mrb[8].mxu1 %v1823_v60 }
 0x1d6   : > { %6307 = vmatprep.mubr.f32.mxu1 %v1833_v46  ;;  %v1882_v46 = vsub.f32 %v8685_v10, %v1881_v32 }
 0x1d8   : > { %v1883_v30 = vand.u32 4294901760, %v1882_v46 }
 0x1d9   : > { %6308 = vmatmul.mubr.f32.gmra.mrb[10].mxu1 %v1843_v15 }
 0x1da   : > { %6310 = vmatprep.mubr.f32.mxu1 %v1853_v29 }
 0x1dd   : > { %6311 = vmatmul.mubr.f32.gmra.mrb[12].mxu1 %v1863_v20 }
 0x1de   : > { %6313 = vmatprep.mubr.f32.mxu1 %v1873_v4  ;;  %v8730_v4 = vpack.c.bf16 %v1899_v61, %v1892_v7  ;;  %v9355_v7 = vand.u32 4294901760, %v8551_v45  ;;  %v9356_v61 = vand.u32 4294901760, %v8571_v58 }
 0x1e1   : > { %6314 = vmatmul.mubr.f32.gmra.mrb[14].mxu1 %v1883_v30 }
 0x1e2   : > { %6324 = vmatprep.mubr.f32.mxu1 %v8542_v62 }
 0x1e5   : > { %6325 = vmatmul.mubr.f32.vlgmr.msra.gmra.mrb[0].mxu1 %v8475_v37 }
 0x1e6   : > { %6927 = vmatpush3.bf16.msra.mxu1 %v8387_v53  ;;  %6327 = vmatprep.mubr.f32.mxu1 %v8505_v47 }
 0x1e7   : > { %6929 = vmatprep.subr.bf16.mxu1 %v8402_v8 }
 0x1e9   : > { %6328 = vmatmul.mubr.f32.gmra.mrb[2].mxu1 %v8502_v1 }
 0x1ea   : > { %6330 = vmatprep.mubr.f32.mxu1 %v8524_v17  ;;  %6931 = vmatpush3.bf16.msra.mxu1 %v8402_v8 }
 0x1eb   : > { %6933 = vmatprep.subr.bf16.mxu1 %v8296_v42 }
 0x1ed   : > { %6331 = vmatmul.mubr.f32.gmra.mrb[4].mxu1 %v8517_v22 }
 0x1ee   : > { %6333 = vmatprep.mubr.f32.mxu1 %v8544_v48 }
 0x1f1   : > { %6334 = vmatmul.mubr.f32.gmra.mrb[6].mxu1 %v8534_v11 }
 0x1f2   : > { %6336 = vmatprep.mubr.f32.mxu1 %v8567_v36 }
 0x1f5   : > { %6337 = vmatmul.mubr.f32.gmra.mrb[8].mxu1 %v8577_v5 }
 0x1f6   : > { %6339 = vmatprep.mubr.f32.mxu1 %v8598_v13 }
 0x1f9   : > { %6340 = vmatmul.mubr.f32.gmra.mrb[10].mxu1 %v8618_v25 }
 0x1fa   : > { %6342 = vmatprep.mubr.f32.mxu1 %v8625_v31 }
 0x1fd   : > { %6343 = vmatmul.mubr.f32.gmra.mrb[12].mxu1 %v8644_v16 }
 0x1fe   : > { %6345 = vmatprep.mubr.f32.mxu1 %v8665_v52 }
 0x201   : > { %6346 = vmatmul.mubr.f32.gmra.mrb[14].mxu1 %v8667_v2 }
 0x202   : > { %6356 = vmatprep.mubr.f32.mxu1 %v8561_v56 }
 0x205   : > { %6357 = vmatmul.mubr.f32.vlgmr.msra.gmra.mrb[0].mxu1 %v8500_v19  ;;  %v9361_v19 = vand.u32 4294901760, %v8642_v3 }
 0x206   : > { %6935 = vmatpush3.bf16.msra.mxu1 %v8296_v42  ;;  %6359 = vmatprep.mubr.f32.mxu1 %v8531_v49 }
 0x207   : > { %6937 = vmatprep.subr.bf16.mxu1 %v8308_v50 }
 0x209   : > { %6360 = vmatmul.mubr.f32.gmra.mrb[2].mxu1 %v8528_v44  ;;  %v9362_v44 = vand.u32 4294901760, %v8648_v63 }
 0x20a   : > { %6362 = vmatprep.mubr.f32.mxu1 %v8554_v39  ;;  %6939 = vmatpush3.bf16.msra.mxu1 %v8308_v50 }
 0x20b   : > { %6941 = vmatprep.subr.bf16.mxu1 %v8730_v4 }
 0x20d   : > { %6363 = vmatmul.mubr.f32.gmra.mrb[4].mxu1 %v8551_v45 }
 0x20e   : > { %6365 = vmatprep.mubr.f32.mxu1 %v8571_v58 }
 0x211   : > { %6366 = vmatmul.mubr.f32.gmra.mrb[6].mxu1 %v8565_v40 }
 0x212   : > { %6368 = vmatprep.mubr.f32.mxu1 %v8595_v9 }
 0x215   : > { %6369 = vmatmul.mubr.f32.gmra.mrb[8].mxu1 %v8611_v51 }
 0x216   : > { %6371 = vmatprep.mubr.f32.mxu1 %v8621_v14 }
 0x219   : > { %6372 = vmatmul.mubr.f32.gmra.mrb[10].mxu1 %v8642_v3 }
 0x21a   : > { %6374 = vmatprep.mubr.f32.mxu1 %v8648_v63 }
 0x21d   : > { %6375 = vmatmul.mubr.f32.gmra.mrb[12].mxu1 %v8663_v57 }
 0x21e   : > { %6377 = vmatprep.mubr.f32.mxu1 %v8674_v27 }
 0x221   : > { %6378 = vmatmul.mubr.f32.gmra.mrb[14].mxu1 %v8685_v10 }
 0x222   : > { %6388 = vmatprep.mubr.f32.mxu1 %v1731_v28 }
 0x225   : > { %6389 = vmatmul.mubr.f32.vlgmr.msra.gmra.mrb[0].mxu1 %v1741_v0 }
 0x226   : > { %6943 = vmatpush3.bf16.msra.mxu1 %v8730_v4  ;;  %6391 = vmatprep.mubr.f32.mxu1 %v1751_v23 }
 0x227   : > { %6945 = vmatprep.subr.bf16.mxu1 %v8753_v24 }
 0x229   : > { %6392 = vmatmul.mubr.f32.gmra.mrb[2].mxu1 %v1761_v59 }
 0x22a   : > { %6394 = vmatprep.mubr.f32.mxu1 %v9354_v54  ;;  %6947 = vmatpush3.bf16.msra.mxu1 %v8753_v24 }
 0x22b   : > { %6949 = vmatprep.subr.bf16.mxu1 %v8296_v42 }
 0x22d   : > { %6395 = vmatmul.mubr.f32.gmra.mrb[4].mxu1 %v9355_v7 }
 0x22e   : > { %6397 = vmatprep.mubr.f32.mxu1 %v9356_v61 }
 0x231   : > { %6398 = vmatmul.mubr.f32.gmra.mrb[6].mxu1 %v9357_v6 }
 0x232   : > { %6400 = vmatprep.mubr.f32.mxu1 %v9358_v18 }
 0x235   : > { %6401 = vmatmul.mubr.f32.gmra.mrb[8].mxu1 %v9359_v33 }
 0x236   : > { %6403 = vmatprep.mubr.f32.mxu1 %v9360_v34 }
 0x239   : > { %6404 = vmatmul.mubr.f32.gmra.mrb[10].mxu1 %v9361_v19 }
 0x23a   : > { %6406 = vmatprep.mubr.f32.mxu1 %v9362_v44 }
 0x23d   : > { %6407 = vmatmul.mubr.f32.gmra.mrb[12].mxu1 %v1861_v55 }
 0x23e   : > { %6409 = vmatprep.mubr.f32.mxu1 %v1871_v35 }
 0x241   : > { %6410 = vmatmul.mubr.f32.gmra.mrb[14].mxu1 %v1881_v32 }
 0x242   : > { %6420 = vmatprep.mubr.f32.mxu1 %v8542_v62 }
 0x245   : > { %6421 = vmatmul.mubr.f32.vlgmr.msra.gmra.mrb[0].mxu1 %v8475_v37 }
 0x246   : > { %6951 = vmatpush3.bf16.msra.mxu1 %v8296_v42  ;;  %6423 = vmatprep.mubr.f32.mxu1 %v8505_v47 }
 0x247   : > { %6953 = vmatprep.subr.bf16.mxu1 %v8308_v50 }
 0x249   : > { %6424 = vmatmul.mubr.f32.gmra.mrb[2].mxu1 %v8502_v1 }
 0x24a   : > { %6426 = vmatprep.mubr.f32.mxu1 %v8524_v17  ;;  %6955 = vmatpush3.bf16.msra.mxu1 %v8308_v50 }
 0x24b   : > { %7005 = vmatprep.subr.bf16.mxu1 %v8296_v42 }
 0x24d   : > { %6427 = vmatmul.mubr.f32.gmra.mrb[4].mxu1 %v8517_v22 }
 0x24e   : > { %6429 = vmatprep.mubr.f32.mxu1 %v8544_v48 }
 0x251   : > { %6430 = vmatmul.mubr.f32.gmra.mrb[6].mxu1 %v8534_v11 }
 0x252   : > { %6432 = vmatprep.mubr.f32.mxu1 %v8567_v36 }
 0x255   : > { %6433 = vmatmul.mubr.f32.gmra.mrb[8].mxu1 %v8577_v5 }
 0x256   : > { %6435 = vmatprep.mubr.f32.mxu1 %v8598_v13 }
 0x258   : > { %v6646_v49 = vpop.f32.mrb[16].mxu0 }
 0x259   : > { %v7084_v45 = vadd.f32 %v6646_v49, %v8424_v12  ;;  %v3987_v39 = vpop.f32.mrb[17].mxu0  ;;  %6436 = vmatmul.mubr.f32.gmra.mrb[10].mxu1 %v8618_v25 }
 0x25a   : > { %v7085_v56 = vadd.f32 %v8424_v12, %v3987_v39  ;;  %6438 = vmatprep.mubr.f32.mxu1 %v8625_v31 }
 0x25b   : > { %v4099_v0 = vmul.f32 1.442695, %v7084_v45  ;;  %vm4082_vm2 = vcmp.gt.f32.partialorder %v7084_v45, 0.0 }
 0x25c   : > { %v4097_v40 = vmul.f32 1.442695, %v7085_v56  ;;  %v6649_v23 = vpop.f32.mrb[18].mxu0  ;;  %vm4081_vm3 = vcmp.gt.f32.partialorder %v7085_v56, 0.0 }
 0x25d   : > { %7510 = vpow2.f32 %v4099_v0  ;;  %v7086_v58 = vadd.f32 %v6649_v23, %v8424_v12  ;;  %v3999_v28 = vpop.f32.mrb[19].mxu0  ;;  %6439 = vmatmul.mubr.f32.gmra.mrb[12].mxu1 %v8644_v16 }
 0x25e   : > { %7512 = vpow2.f32 %v4097_v40  ;;  %v8811_v59 = vadd.f32 %v8424_v12, %v3999_v28  ;;  %6441 = vmatprep.mubr.f32.mxu1 %v8665_v52 }
 0x25f   : > { %v4103_v9 = vmul.f32 1.442695, %v7086_v58  ;;  %vm4084_vm4 = vcmp.gt.f32.partialorder %v7086_v58, 0.0 }
 0x260   : > { %v4101_v51 = vmul.f32 1.442695, %v8811_v59  ;;  %v6652_v63 = vpop.f32.mrb[20].mxu0  ;;  %vm4083_vm5 = vcmp.gt.f32.partialorder %v8811_v59, 0.0 }
 0x261   : > { %7514 = vpow2.f32 %v4103_v9  ;;  %v8816_v14 = vadd.f32 %v6652_v63, %v8424_v12  ;;  %v4011_v10 = vpop.f32.mrb[21].mxu0  ;;  %6442 = vmatmul.mubr.f32.gmra.mrb[14].mxu1 %v8667_v2 }
 0x262   : > { %7516 = vpow2.f32 %v4101_v51  ;;  %v8820_v3 = vadd.f32 %v8424_v12, %v4011_v10  ;;  %6452 = vmatprep.mubr.f32.mxu1 %v8542_v62 }
 0x263   : > { %v4107_v55 = vmul.f32 1.442695, %v8816_v14  ;;  %vm4086_vm6 = vcmp.gt.f32.partialorder %v8816_v14, 0.0 }
 0x264   : > { %v4105_v35 = vmul.f32 1.442695, %v8820_v3  ;;  %v6655_v57 = vpop.f32.mrb[22].mxu0  ;;  %vm4085_vm7 = vcmp.gt.f32.partialorder %v8820_v3, 0.0 }
 0x265   : > { %7518 = vpow2.f32 %v4107_v55  ;;  %v8826_v27 = vadd.f32 %v6655_v57, %v8424_v12  ;;  %v4023_v20 = vpop.f32.mrb[23].mxu0  ;;  %6453 = vmatmul.mubr.f32.vlgmr.msra.gmra.mrb[0].mxu1 %v8475_v37 }
 0x266   : > { %7520 = vpow2.f32 %v4105_v35  ;;  %v8830_v60 = vadd.f32 %v8424_v12, %v4023_v20  ;;  %7007 = vmatpush3.bf16.msra.mxu1 %v8296_v42  ;;  %6455 = vmatprep.mubr.f32.mxu1 %v8505_v47 }
 0x267   : > { %v7511_v43 = vpop.eup %7510  ;;  %v4111_v62 = vmul.f32 1.442695, %v8826_v27  ;;  %7009 = vmatprep.subr.bf16.mxu1 %v8308_v50  ;;  %vm4088_vm8 = vcmp.gt.f32.partialorder %v8826_v27, 0.0 }
 0x268   : > { %v7513_v29 = vpop.eup %7512  ;;  %v5558_v21 = vadd.f32 -1.0, %v7511_v43  ;;  %v4109_v15 = vmul.f32 1.442695, %v8830_v60  ;;  %v6658_v26 = vpop.f32.mrb[24].mxu0  ;;  %vm4087_vm9 = vcmp.gt.f32.partialorder %v8830_v60, 0.0 }
 0x269   : > { %v5557_v37 = vadd.f32 -1.0, %v7513_v29  ;;  %7522 = vpow2.f32 %v4111_v62  ;;  %v8838_v32 = vadd.f32 %v6658_v26, %v8424_v12  ;;  %v4035_v46 = vpop.f32.mrb[25].mxu0  ;;  %6456 = vmatmul.mubr.f32.gmra.mrb[2].mxu1 %v8502_v1 }
 0x26a   : > { %v4146_v30 = vsel %vm4082_vm2, %v7084_v45, %v5558_v21  ;;  %7524 = vpow2.f32 %v4109_v15  ;;  %v8842_v47 = vadd.f32 %v8424_v12, %v4035_v46  ;;  %6458 = vmatprep.mubr.f32.mxu1 %v8524_v17  ;;  %7011 = vmatpush3.bf16.msra.mxu1 %v8308_v50 }
 0x26b   : > { %v7515_v54 = vpop.eup %7514  ;;  %v4165_v7 = vsel %vm347_vm0, %v4146_v30, 0  ;;  %v4115_v61 = vmul.f32 1.442695, %v8838_v32  ;;  %v4145_v33 = vsel %vm4081_vm3, %v7085_v56, %v5557_v37  ;;  %7013 = vmatprep.subr.bf16.mxu1 %v8369_v38  ;;  %vm4090_vm10 = vcmp.gt.f32.partialorder %v8838_v32, 0.0 }
 0x26c   : > { %v7517_v6 = vpop.eup %7516  ;;  %v8848_v18 = vand.u32 4294901760, %v4165_v7  ;;  %v5560_v34 = vadd.f32 -1.0, %v7515_v54  ;;  %v6661_v1 = vpop.f32.mrb[26].mxu0  ;;  %v4113_v44 = vmul.f32 1.442695, %v8842_v47  ;;  %v4162_v0 = vsel %vm347_vm0, %v4145_v33, 0 }
 0x26d   : > { %v5559_v19 = vadd.f32 -1.0, %v7517_v6  ;;  %7526 = vpow2.f32 %v4115_v61  ;;  %v4047_v49 = vpop.f32.mrb[27].mxu0  ;;  %6459 = vmatmul.mubr.f32.gmra.mrb[4].mxu1 %v8517_v22  ;;  %v8855_v17 = vadd.f32 %v6661_v1, %v8424_v12  ;;  %vm4089_vm11 = vcmp.gt.f32.partialorder %v8842_v47, 0.0 }
 0x26e   : > { %v4148_v45 = vsel %vm4084_vm4, %v7086_v58, %v5560_v34  ;;  %v8858_v56 = vsub.f32 %v4165_v7, %v8848_v18  ;;  %6461 = vmatprep.mubr.f32.mxu1 %v8544_v48  ;;  %7528 = vpow2.f32 %v4113_v44  ;;  %v8865_v22 = vadd.f32 %v8424_v12, %v4047_v49 }
 0x26f   : > { %v7519_v39 = vpop.eup %7518  ;;  %v4147_v40 = vsel %vm4083_vm5, %v8811_v59, %v5559_v19  ;;  %v4171_v9 = vsel %vm347_vm0, %v4148_v45, 0  ;;  %v4119_v10 = vmul.f32 1.442695, %v8855_v17  ;;  %v8870_v59 = vand.u32 4294901760, %v4162_v0 }
 0x270   : > { %v7521_v23 = vpop.eup %7520  ;;  %v5562_v58 = vadd.f32 -1.0, %v7519_v39  ;;  %v6664_v28 = vpop.f32.mrb[28].mxu0  ;;  %v4168_v51 = vsel %vm347_vm0, %v4147_v40, 0  ;;  %v4290_v35 = vand.u32 4294901760, %v8858_v56  ;;  %v8882_v62 = vand.u32 4294901760, %v4171_v9 }
 0x271   : > { %v5561_v63 = vadd.f32 -1.0, %v7521_v23  ;;  %v4059_v55 = vpop.f32.mrb[29].mxu0  ;;  %6462 = vmatmul.mubr.f32.gmra.mrb[6].mxu1 %v8534_v11  ;;  %7530 = vpow2.f32 %v4119_v10  ;;  %v8884_v11 = vand.u32 4294901760, %v4168_v51  ;;  %v4117_v21 = vmul.f32 1.442695, %v8865_v22 }
 0x272   : > { %v4150_v57 = vsel %vm4086_vm6, %v8816_v14, %v5562_v58  ;;  %6464 = vmatprep.mubr.f32.mxu1 %v8567_v36  ;;  %v8890_v14 = vadd.f32 %v6664_v28, %v8424_v12  ;;  %v8893_v36 = vadd.f32 %v8424_v12, %v4059_v55  ;;  %v8896_v46 = vsub.f32 %v4162_v0, %v8870_v59 }
 0x273   : > { %v7523_v48 = vpop.eup %7522  ;;  %v4149_v20 = vsel %vm4085_vm7, %v8820_v3, %v5561_v63  ;;  %v4177_v30 = vsel %vm347_vm0, %v4150_v57, 0  ;;  %7532 = vpow2.f32 %v4117_v21  ;;  %v8904_v7 = vsub.f32 %v8858_v56, %v4290_v35 }
 0x274   : > { %v7525_v43 = vpop.eup %7524  ;;  %v5564_v29 = vadd.f32 -1.0, %v7523_v48  ;;  %v6667_v15 = vpop.f32.mrb[30].mxu0  ;;  %v4174_v26 = vsel %vm347_vm0, %v4149_v20, 0  ;;  %vm4092_vm12 = vcmp.gt.f32.partialorder %v8855_v17, 0.0  ;;  %v4123_v1 = vmul.f32 1.442695, %v8890_v14 }
 0x275   : > { %v5563_v37 = vadd.f32 -1.0, %v7525_v43  ;;  %v4071_v3 = vpop.f32.mrb[31].mxu0  ;;  %6465 = vmatmul.mubr.f32.gmra.mrb[8].mxu1 %v8577_v5  ;;  %v8912_v6 = vadd.f32 %v6667_v15, %v8424_v12  ;;  %v8914_v5 = vand.u32 4294901760, %v4174_v26  ;;  %v8927_v44 = vand.u32 4294901760, %v4177_v30 }
 0x276   : > { %6467 = vmatprep.mubr.f32.mxu1 %v8598_v13  ;;  %v4152_v33 = vsel %vm4088_vm8, %v8826_v27, %v5564_v29  ;;  %v8925_v13 = vsub.f32 %v4168_v51, %v8884_v11  ;;  %v4121_v49 = vmul.f32 1.442695, %v8893_v36  ;;  %7534 = vpow2.f32 %v4123_v1 }
 0x277   : > { %v7527_v54 = vpop.eup %7526  ;;  %v4151_v61 = vsel %vm4087_vm9, %v8830_v60, %v5563_v37  ;;  %v8922_v60 = vsub.f32 %v4171_v9, %v8882_v62  ;;  %v4183_v27 = vsel %vm347_vm0, %v4152_v33, 0  ;;  %vm4091_vm13 = vcmp.gt.f32.partialorder %v8865_v22, 0.0 }
 0x278   : > { %v4180_v34 = vsel %vm347_vm0, %v4151_v61, 0  ;;  %v7529_v19 = vpop.eup %7528  ;;  %v5566_v39 = vadd.f32 -1.0, %v7527_v54  ;;  %7536 = vpow2.f32 %v4121_v49  ;;  %v4127_v40 = vmul.f32 1.442695, %v8912_v6 }
 0x279   : > { %v8930_v45 = vand.u32 4294901760, %v4180_v34  ;;  %v5565_v0 = vadd.f32 -1.0, %v7529_v19  ;;  %6468 = vmatmul.mubr.f32.gmra.mrb[10].mxu1 %v8618_v25  ;;  %v8938_v23 = vsub.f32 %v4174_v26, %v8914_v5  ;;  %v8944_v28 = vadd.f32 %v8424_v12, %v4071_v3 }
 0x27a   : > { %6470 = vmatprep.mubr.f32.mxu1 %v8625_v31  ;;  %v4280_v25 = vand.u32 4294901760, %v8896_v46  ;;  %v8948_v31 = vsub.f32 %v4177_v30, %v8927_v44  ;;  %7538 = vpow2.f32 %v4127_v40  ;;  %v4300_v63 = vand.u32 4294901760, %v8925_v13 }
 0x27b   : > { %v4153_v58 = vsel %vm4089_vm11, %v8842_v47, %v5565_v0  ;;  %v7531_v9 = vpop.eup %7530  ;;  %v8952_v10 = vand.u32 4294901760, %v4183_v27  ;;  %v8955_v55 = vsub.f32 %v4180_v34, %v8930_v45  ;;  %v4154_v12 = vsel %vm4090_vm10, %v8838_v32, %v5566_v39 }
 0x27c   : > { %v4186_v51 = vsel %vm347_vm0, %v4153_v58, 0  ;;  %v5568_v47 = vadd.f32 -1.0, %v7531_v9  ;;  %v4125_v57 = vmul.f32 1.442695, %v8944_v28  ;;  %v4281_v20 = vsub.f32 %v8896_v46, %v4280_v25 }
 0x27d   : > { %6471 = vmatmul.mubr.f32.gmra.mrb[12].mxu1 %v8644_v16  ;;  %v8961_v48 = vand.u32 4294901760, %v4186_v51  ;;  %v4301_v43 = vsub.f32 %v8925_v13, %v4300_v63  ;;  %v7533_v29 = vpop.eup %7532  ;;  %vm4094_vm14 = vcmp.gt.f32.partialorder %v8890_v14, 0.0  ;;  %v4310_v16 = vand.u32 4294901760, %v8922_v60 }
 0x27e   : > { %6473 = vmatprep.mubr.f32.mxu1 %v8665_v52  ;;  %v4156_v32 = vsel %vm4092_vm12, %v8855_v17, %v5568_v47  ;;  %v4320_v52 = vand.u32 4294901760, %v8938_v23  ;;  %v4189_v21 = vsel %vm347_vm0, %v4154_v12, 0  ;;  %v5567_v15 = vadd.f32 -1.0, %v7533_v29 }
 0x27f   : > { %7540 = vpow2.f32 %v4125_v57  ;;  %v4282_v26 = vand.u32 4294901760, %v4281_v20  ;;  %v8979_v37 = vsub.f32 %v4183_v27, %v8952_v10  ;;  %v4195_v3 = vsel %vm347_vm0, %v4156_v32, 0 }
 0x280   : > { %v4321_v17 = vsub.f32 %v8938_v23, %v4320_v52  ;;  %v4330_v30 = vand.u32 4294901760, %v8948_v31  ;;  %v8988_v54 = vsub.f32 %v4186_v51, %v8961_v48  ;;  %v4155_v61 = vsel %vm4091_vm13, %v8865_v22, %v5567_v15  ;;  %v7535_v1 = vpop.eup %7534 }
 0x281   : > { %6474 = vmatmul.mubr.f32.gmra.mrb[14].mxu1 %v8667_v2  ;;  %v4302_v33 = vand.u32 4294901760, %v4301_v43  ;;  %v4340_v34 = vand.u32 4294901760, %v8955_v55  ;;  %v8994_v19 = vand.u32 4294901760, %v4189_v21  ;;  %v4192_v2 = vsel %vm347_vm0, %v4155_v61, 0 }
 0x282   : > { %6676 = vmatprep.mubr.f32.mxu1 %v4282_v26  ;;  %v4292_v49 = vand.u32 4294901760, %v8904_v7  ;;  %v4311_v39 = vsub.f32 %v8922_v60, %v4310_v16  ;;  %v7537_v0 = vpop.eup %7536  ;;  %v9001_v27 = vand.u32 4294901760, %v4195_v3  ;;  %v9003_v40 = vand.u32 4294901760, %v4192_v2 }
 0x283   : > { %v5570_v22 = vadd.f32 -1.0, %v7535_v1  ;;  %vm4093_vm15 = vcmp.gt.f32.partialorder %v8893_v36, 0.0  ;;  %v5569_v58 = vadd.f32 -1.0, %v7537_v0  ;;  %v4322_v9 = vand.u32 4294901760, %v4321_v17 }
 0x284   : > { %v4331_v51 = vsub.f32 %v8948_v31, %v4330_v30  ;;  %v4350_v7 = vand.u32 4294901760, %v8979_v37  ;;  %v7539_v12 = vpop.eup %7538  ;;  %v9011_v47 = vsub.f32 %v4192_v2, %v9003_v40  ;;  %v4341_v20 = vsub.f32 %v8955_v55, %v4340_v34 }
 0x285   : > { %6677 = vmatmul.mubr.f32.vlgmr.msra.gmra.mrb[16].mxu1 %v4292_v49  ;;  %v4158_v57 = vsel %vm4094_vm14, %v8890_v14, %v5570_v22  ;;  %v4360_v43 = vand.u32 4294901760, %v8988_v54  ;;  %v9022_v29 = vsub.f32 %v4189_v21, %v8994_v19  ;;  %v4157_v32 = vsel %vm4093_vm15, %v8893_v36, %v5569_v58 }
 0x286   : > { %7015 = vmatpush3.bf16.msra.mxu1 %v8369_v38  ;;  %6679 = vmatprep.mubr.f32.mxu1 %v4302_v33  ;;  %v5572_v15 = vadd.f32 -1.0, %v7539_v12  ;;  %v4312_v26 = vand.u32 4294901760, %v4311_v39  ;;  %v4201_v14 = vsel %vm347_vm0, %v4158_v57, 0  ;;  %v4198_v38 = vsel %vm347_vm0, %v4157_v32, 0 }
 0x287   : > { %7017 = vmatprep.subr.bf16.mxu1 %v8376_v41  ;;  %vm4096_vm1 = vcmp.gt.f32.partialorder %v8912_v6, 0.0  ;;  %v9030_v17 = vsub.f32 %v4195_v3, %v9001_v27  ;;  %v9032_v61 = vand.u32 4294901760, %v4198_v38  ;;  %v4351_v36 = vsub.f32 %v8979_v37, %v4350_v7 }
 0x288   : > { %v4160_v21 = vsel %vm4096_vm1, %v8912_v6, %v5572_v15  ;;  %v4332_v1 = vand.u32 4294901760, %v4331_v51  ;;  %v4342_v2 = vand.u32 4294901760, %v4341_v20  ;;  %v4361_v49 = vsub.f32 %v8988_v54, %v4360_v43 }
 0x289   : > { %6680 = vmatmul.mubr.f32.gmra.mrb[18].mxu1 %v4312_v26  ;;  %v7541_v33 = vpop.eup %7540  ;;  %v4380_v3 = vand.u32 4294901760, %v9011_v47  ;;  %v9043_v39 = vand.u32 4294901760, %v4201_v14  ;;  %v9046_v6 = vsub.f32 %v4198_v38, %v9032_v61  ;;  %v4370_v22 = vand.u32 4294901760, %v9022_v29 }
 0x28a   : > { %6682 = vmatprep.mubr.f32.mxu1 %v4322_v9  ;;  %7019 = vmatpush3.bf16.msra.mxu1 %v8376_v41  ;;  %v5571_v0 = vadd.f32 -1.0, %v7541_v33  ;;  %v4207_v58 = vsel %vm347_vm0, %v4160_v21, 0  ;;  %vm4095_vm2 = vcmp.gt.f32.partialorder %v8944_v28, 0.0  ;;  %v4352_v41 = vand.u32 4294901760, %v4351_v36 }
 0x28b   : > { %7021 = vmatprep.subr.bf16.mxu1 %v8387_v53  ;;  %v4390_v51 = vand.u32 4294901760, %v9030_v17  ;;  %v4362_v57 = vand.u32 4294901760, %v4361_v49  ;;  %v4381_v20 = vsub.f32 %v9011_v47, %v4380_v3  ;;  %v4400_v32 = vand.u32 4294901760, %v9046_v6 }
 0x28c   : > { %v4159_v9 = vsel %vm4095_vm2, %v8944_v28, %v5571_v0  ;;  %v9060_v15 = vsub.f32 %v4201_v14, %v9043_v39  ;;  %v9062_v26 = vand.u32 4294901760, %v4207_v58  ;;  %v4371_v38 = vsub.f32 %v9022_v29, %v4370_v22 }
 0x28d   : > { %6683 = vmatmul.mubr.f32.gmra.mrb[20].mxu1 %v4332_v1  ;;  %v4204_v12 = vsel %vm347_vm0, %v4159_v9, 0  ;;  %v4382_v36 = vand.u32 4294901760, %v4381_v20  ;;  %v4391_v33 = vsub.f32 %v9030_v17, %v4390_v51  ;;  %v4401_v14 = vsub.f32 %v9046_v6, %v4400_v32 }
 0x28e   : > { %6685 = vmatprep.mubr.f32.mxu1 %v4342_v2  ;;  %v9064_v28 = vand.u32 4294901760, %v4204_v12  ;;  %v9079_v1 = vsub.f32 %v4207_v58, %v9062_v26  ;;  %v4372_v2 = vand.u32 4294901760, %v4371_v38  ;;  %v4410_v49 = vand.u32 4294901760, %v9060_v15 }
 0x28f   : > { %v4402_v9 = vand.u32 4294901760, %v4401_v14  ;;  %vm2870_vm0 = vcmask 257024  }
 0x290   : > { %v9070_v21 = vsub.f32 %v4204_v12, %v9064_v28  ;;  %v4392_v12 = vand.u32 4294901760, %v4391_v33  ;;  %v4430_v58 = vand.u32 4294901760, %v9079_v1 }
 0x291   : > { %6686 = vmatmul.mubr.f32.gmra.mrb[22].mxu1 %v4352_v41 }
 0x292   : > { %6688 = vmatprep.mubr.f32.mxu1 %v4362_v57  ;;  %v4420_v0 = vand.u32 4294901760, %v9070_v21  ;;  %v4411_v57 = vsub.f32 %v9060_v15, %v4410_v49 }
 0x294   : > { %v4421_v41 = vsub.f32 %v9070_v21, %v4420_v0  ;;  %v4412_v38 = vand.u32 4294901760, %v4411_v57 }
 0x295   : > { %6689 = vmatmul.mubr.f32.gmra.mrb[24].mxu1 %v4372_v2 }
 0x296   : > { %6691 = vmatprep.mubr.f32.mxu1 %v4382_v36  ;;  %v4422_v20 = vand.u32 4294901760, %v4421_v41  ;;  %v4431_v36 = vsub.f32 %v9079_v1, %v4430_v58 }
 0x298   : > { %v4432_v14 = vand.u32 4294901760, %v4431_v36 }
 0x299   : > { %6692 = vmatmul.mubr.f32.gmra.mrb[26].mxu1 %v4392_v12 }
 0x29a   : > { %6694 = vmatprep.mubr.f32.mxu1 %v4402_v9 }
 0x29d   : > { %6695 = vmatmul.mubr.f32.gmra.mrb[28].mxu1 %v4412_v38 }
 0x29e   : > { %6697 = vmatprep.mubr.f32.mxu1 %v4422_v20 }
 0x2a1   : > { %6698 = vmatmul.mubr.f32.gmra.mrb[30].mxu1 %v4432_v14 }
 0x2a2   : > { %6708 = vmatprep.mubr.f32.mxu1 %v8870_v59 }
 0x2a5   : > { %6709 = vmatmul.mubr.f32.vlgmr.msra.gmra.mrb[16].mxu1 %v8848_v18 }
 0x2a6   : > { %7023 = vmatpush3.bf16.msra.mxu1 %v8387_v53  ;;  %6711 = vmatprep.mubr.f32.mxu1 %v8884_v11 }
 0x2a7   : > { %7025 = vmatprep.subr.bf16.mxu1 %v8402_v8 }
 0x2a9   : > { %6712 = vmatmul.mubr.f32.gmra.mrb[18].mxu1 %v8882_v62 }
 0x2aa   : > { %6714 = vmatprep.mubr.f32.mxu1 %v8914_v5  ;;  %7027 = vmatpush3.bf16.msra.mxu1 %v8402_v8 }
 0x2ab   : > { %7029 = vmatprep.subr.bf16.mxu1 %v8296_v42 }
 0x2ad   : > { %6715 = vmatmul.mubr.f32.gmra.mrb[20].mxu1 %v8927_v44 }
 0x2ae   : > { %6717 = vmatprep.mubr.f32.mxu1 %v8930_v45 }
 0x2b1   : > { %6718 = vmatmul.mubr.f32.gmra.mrb[22].mxu1 %v8952_v10 }
 0x2b2   : > { %6720 = vmatprep.mubr.f32.mxu1 %v8961_v48 }
 0x2b5   : > { %6721 = vmatmul.mubr.f32.gmra.mrb[24].mxu1 %v8994_v19 }
 0x2b6   : > { %6723 = vmatprep.mubr.f32.mxu1 %v9003_v40 }
 0x2b9   : > { %6724 = vmatmul.mubr.f32.gmra.mrb[26].mxu1 %v9001_v27 }
 0x2ba   : > { %6726 = vmatprep.mubr.f32.mxu1 %v9032_v61 }
 0x2bd   : > { %6727 = vmatmul.mubr.f32.gmra.mrb[28].mxu1 %v9043_v39 }
 0x2be   : > { %6729 = vmatprep.mubr.f32.mxu1 %v9064_v28 }
 0x2c1   : > { %6730 = vmatmul.mubr.f32.gmra.mrb[30].mxu1 %v9062_v26 }
 0x2c2   : > { %6740 = vmatprep.mubr.f32.mxu1 %v8896_v46 }
 0x2c5   : > { %6741 = vmatmul.mubr.f32.vlgmr.msra.gmra.mrb[16].mxu1 %v8858_v56 }
 0x2c6   : > { %7031 = vmatpush3.bf16.msra.mxu1 %v8296_v42  ;;  %6743 = vmatprep.mubr.f32.mxu1 %v8925_v13 }
 0x2c7   : > { %7033 = vmatprep.subr.bf16.mxu1 %v8308_v50 }
 0x2c9   : > { %6744 = vmatmul.mubr.f32.gmra.mrb[18].mxu1 %v8922_v60 }
 0x2ca   : > { %6746 = vmatprep.mubr.f32.mxu1 %v8938_v23  ;;  %7035 = vmatpush3.bf16.msra.mxu1 %v8308_v50 }
 0x2cb   : > { %7037 = vmatprep.subr.bf16.mxu1 %v8730_v4 }
 0x2cd   : > { %6747 = vmatmul.mubr.f32.gmra.mrb[20].mxu1 %v8948_v31 }
 0x2ce   : > { %6749 = vmatprep.mubr.f32.mxu1 %v8955_v55 }
 0x2d1   : > { %6750 = vmatmul.mubr.f32.gmra.mrb[22].mxu1 %v8979_v37 }
 0x2d2   : > { %6752 = vmatprep.mubr.f32.mxu1 %v8988_v54 }
 0x2d5   : > { %6753 = vmatmul.mubr.f32.gmra.mrb[24].mxu1 %v9022_v29 }
 0x2d6   : > { %6755 = vmatprep.mubr.f32.mxu1 %v9011_v47 }
 0x2d9   : > { %6756 = vmatmul.mubr.f32.gmra.mrb[26].mxu1 %v9030_v17 }
 0x2da   : > { %6758 = vmatprep.mubr.f32.mxu1 %v9046_v6 }
 0x2dd   : > { %6759 = vmatmul.mubr.f32.gmra.mrb[28].mxu1 %v9060_v15 }
 0x2de   : > { %6761 = vmatprep.mubr.f32.mxu1 %v9070_v21 }
 0x2e1   : > { %6762 = vmatmul.mubr.f32.gmra.mrb[30].mxu1 %v9079_v1 }
 0x2e2   : > { %6772 = vmatprep.mubr.f32.mxu1 %v4280_v25 }
 0x2e5   : > { %6773 = vmatmul.mubr.f32.vlgmr.msra.gmra.mrb[16].mxu1 %v4290_v35 }
 0x2e6   : > { %7039 = vmatpush3.bf16.msra.mxu1 %v8730_v4  ;;  %6775 = vmatprep.mubr.f32.mxu1 %v4300_v63 }
 0x2e7   : > { %7041 = vmatprep.subr.bf16.mxu1 %v8753_v24 }
 0x2e9   : > { %6776 = vmatmul.mubr.f32.gmra.mrb[18].mxu1 %v4310_v16 }
 0x2ea   : > { %6778 = vmatprep.mubr.f32.mxu1 %v4320_v52  ;;  %7043 = vmatpush3.bf16.msra.mxu1 %v8753_v24 }
 0x2eb   : > { %7045 = vmatprep.subr.bf16.mxu1 %v8296_v42 }
 0x2ed   : > { %6779 = vmatmul.mubr.f32.gmra.mrb[20].mxu1 %v4330_v30 }
 0x2ee   : > { %6781 = vmatprep.mubr.f32.mxu1 %v4340_v34 }
 0x2f1   : > { %6782 = vmatmul.mubr.f32.gmra.mrb[22].mxu1 %v4350_v7 }
 0x2f2   : > { %6784 = vmatprep.mubr.f32.mxu1 %v4360_v43 }
 0x2f5   : > { %6785 = vmatmul.mubr.f32.gmra.mrb[24].mxu1 %v4370_v22 }
 0x2f6   : > { %6787 = vmatprep.mubr.f32.mxu1 %v4380_v3 }
 0x2f9   : > { %6788 = vmatmul.mubr.f32.gmra.mrb[26].mxu1 %v4390_v51 }
 0x2fa   : > { %6790 = vmatprep.mubr.f32.mxu1 %v4400_v32 }
 0x2fd   : > { %6791 = vmatmul.mubr.f32.gmra.mrb[28].mxu1 %v4410_v49 }
 0x2fe   : > { %6793 = vmatprep.mubr.f32.mxu1 %v4420_v0 }
 0x301   : > { %6794 = vmatmul.mubr.f32.gmra.mrb[30].mxu1 %v4430_v58 }
 0x302   : > { %6804 = vmatprep.mubr.f32.mxu1 %v8870_v59 }
 0x305   : > { %6805 = vmatmul.mubr.f32.vlgmr.msra.gmra.mrb[16].mxu1 %v8848_v18 }
 0x306   : > { %7047 = vmatpush3.bf16.msra.mxu1 %v8296_v42  ;;  %6807 = vmatprep.mubr.f32.mxu1 %v8884_v11  ;;  %v9202_v42 = vld [vmem:[%s9334_s5] ss:$0 sm:$0xff] }
 0x307   : > { %7049 = vmatprep.subr.bf16.mxu1 %v8308_v50 }
 0x309   : > { %6808 = vmatmul.mubr.f32.gmra.mrb[18].mxu1 %v8882_v62 }
 0x30a   : > { %6810 = vmatprep.mubr.f32.mxu1 %v8914_v5  ;;  %7051 = vmatpush3.bf16.msra.mxu1 %v8308_v50 }
 0x30d   : > { %6811 = vmatmul.mubr.f32.gmra.mrb[20].mxu1 %v8927_v44 }
 0x30e   : > { %6813 = vmatprep.mubr.f32.mxu1 %v8930_v45 }
 0x311   : > { %6814 = vmatmul.mubr.f32.gmra.mrb[22].mxu1 %v8952_v10 }
 0x312   : > { %6816 = vmatprep.mubr.f32.mxu1 %v8961_v48 }
 0x315   : > { %6817 = vmatmul.mubr.f32.gmra.mrb[24].mxu1 %v8994_v19 }
 0x316   : > { %6819 = vmatprep.mubr.f32.mxu1 %v9003_v40 }
 0x319   : > { %6820 = vmatmul.mubr.f32.gmra.mrb[26].mxu1 %v9001_v27 }
 0x31a   : > { %6822 = vmatprep.mubr.f32.mxu1 %v9032_v61 }
 0x31d   : > { %6823 = vmatmul.mubr.f32.gmra.mrb[28].mxu1 %v9043_v39 }
 0x31e   : > { %6825 = vmatprep.mubr.f32.mxu1 %v9064_v28 }
 0x321   : > { %6826 = vmatmul.mubr.f32.gmra.mrb[30].mxu1 %v9062_v26 }
 0x322   : > { %6836 = vmatprep.mubr.f32.mxu1 %v8870_v59 }
 0x325   : > { %6837 = vmatmul.mubr.f32.vlgmr.msra.gmra.mrb[16].mxu1 %v8848_v18 }
 0x326   : > { %6839 = vmatprep.mubr.f32.mxu1 %v8884_v11 }
 0x329   : > { %6840 = vmatmul.mubr.f32.gmra.mrb[18].mxu1 %v8882_v62 }
 0x32a   : > { %6842 = vmatprep.mubr.f32.mxu1 %v8914_v5 }
 0x32d   : > { %6843 = vmatmul.mubr.f32.gmra.mrb[20].mxu1 %v8927_v44 }
 0x32e   : > { %6845 = vmatprep.mubr.f32.mxu1 %v8930_v45 }
 0x331   : > { %6846 = vmatmul.mubr.f32.gmra.mrb[22].mxu1 %v8952_v10 }
 0x332   : > { %6848 = vmatprep.mubr.f32.mxu1 %v8961_v48 }
 0x335   : > { %6849 = vmatmul.mubr.f32.gmra.mrb[24].mxu1 %v8994_v19 }
 0x336   : > { %6851 = vmatprep.mubr.f32.mxu1 %v9003_v40 }
 0x338   : > { %v6454_v50 = vpop.f32.mrb[0].mxu1 }
 0x339   : > { %v7068_v53 = vadd.f32 %v6454_v50, %v9202_v42  ;;  %v2696_v8 = vpop.f32.mrb[1].mxu1  ;;  %6852 = vmatmul.mubr.f32.gmra.mrb[26].mxu1 %v9001_v27 }
 0x33a   : > { %v7069_v4 = vadd.f32 %v9202_v42, %v2696_v8  ;;  %6854 = vmatprep.mubr.f32.mxu1 %v9032_v61 }
 0x33b   : > { %v2791_v24 = vmul.f32 2.0, %v7068_v53 }
 0x33c   : > { %v2790_v18 = vmul.f32 2.0, %v7069_v4  ;;  %v6457_v56 = vpop.f32.mrb[2].mxu1 }
 0x33d   : > { %v5582_v59 = vpack.c.bf16 %v2791_v24, %v2791_v24  ;;  %v7070_v35 = vadd.f32 %v6457_v56, %v9202_v42  ;;  %v2708_v62 = vpop.f32.mrb[3].mxu1  ;;  %6855 = vmatmul.mubr.f32.gmra.mrb[28].mxu1 %v9043_v39 }
 0x33e   : > { %v5581_v11 = vpack.c.bf16 %v2790_v18, %v2790_v18  ;;  %v7071_v46 = vadd.f32 %v9202_v42, %v2708_v62  ;;  %6857 = vmatprep.mubr.f32.mxu1 %v9064_v28 }
 0x33f   : > { %2872 = vst.msk [vmem:[%s9212_s17 + $0x4] sm:$0xf] %vm2870_vm0, %v5582_v59  ;;  %v2793_v5 = vmul.f32 2.0, %v7070_v35 }
 0x340   : > { %2871 = vst.msk [vmem:[%s9212_s17] sm:$0xf] %vm2870_vm0, %v5581_v11  ;;  %v2792_v60 = vmul.f32 2.0, %v7071_v46  ;;  %v6460_v13 = vpop.f32.mrb[4].mxu1 }
 0x341   : > { %v5584_v44 = vpack.c.bf16 %v2793_v5, %v2793_v5  ;;  %v7072_v45 = vadd.f32 %v6460_v13, %v9202_v42  ;;  %v2720_v23 = vpop.f32.mrb[5].mxu1  ;;  %6858 = vmatmul.mubr.f32.gmra.mrb[30].mxu1 %v9062_v26 }
 0x342   : > { %v5583_v25 = vpack.c.bf16 %v2792_v60, %v2792_v60  ;;  %v7073_v31 = vadd.f32 %v9202_v42, %v2720_v23 }
 0x343   : > { %2874 = vst.msk [vmem:[%s9212_s17 + $0xc] sm:$0xf] %vm2870_vm0, %v5584_v44  ;;  %v2795_v63 = vmul.f32 2.0, %v7072_v45 }
 0x344   : > { %2873 = vst.msk [vmem:[%s9212_s17 + $0x8] sm:$0xf] %vm2870_vm0, %v5583_v25  ;;  %v2794_v10 = vmul.f32 2.0, %v7073_v31  ;;  %v6463_v55 = vpop.f32.mrb[6].mxu1 }
 0x345   : > { %v5586_v48 = vpack.c.bf16 %v2795_v63, %v2795_v63  ;;  %v7074_v16 = vadd.f32 %v6463_v55, %v9202_v42  ;;  %v2732_v52 = vpop.f32.mrb[7].mxu1 }
 0x346   : > { %v5585_v37 = vpack.c.bf16 %v2794_v10, %v2794_v10  ;;  %v7075_v30 = vadd.f32 %v9202_v42, %v2732_v52 }
 0x347   : > { %2876 = vst.msk [vmem:[%s9212_s17 + $0x14] sm:$0xf] %vm2870_vm0, %v5586_v48  ;;  %v2797_v54 = vmul.f32 2.0, %v7074_v16 }
 0x348   : > { %2875 = vst.msk [vmem:[%s9212_s17 + $0x10] sm:$0xf] %vm2870_vm0, %v5585_v37  ;;  %v2796_v34 = vmul.f32 2.0, %v7075_v30  ;;  %v6466_v19 = vpop.f32.mrb[8].mxu1 }
 0x349   : > { %v5588_v27 = vpack.c.bf16 %v2797_v54, %v2797_v54  ;;  %v7076_v40 = vadd.f32 %v6466_v19, %v9202_v42  ;;  %v2744_v7 = vpop.f32.mrb[9].mxu1 }
 0x34a   : > { %v5587_v47 = vpack.c.bf16 %v2796_v34, %v2796_v34  ;;  %v7077_v43 = vadd.f32 %v9202_v42, %v2744_v7 }
 0x34b   : > { %2878 = vst.msk [vmem:[%s9212_s17 + $0x1c] sm:$0xf] %vm2870_vm0, %v5588_v27  ;;  %v2799_v29 = vmul.f32 2.0, %v7076_v40 }
 0x34c   : > { %2877 = vst.msk [vmem:[%s9212_s17 + $0x18] sm:$0xf] %vm2870_vm0, %v5587_v47  ;;  %v2798_v17 = vmul.f32 2.0, %v7077_v43  ;;  %v6469_v61 = vpop.f32.mrb[10].mxu1 }
 0x34d   : > { %v5590_v3 = vpack.c.bf16 %v2799_v29, %v2799_v29  ;;  %v7078_v39 = vadd.f32 %v6469_v61, %v9202_v42  ;;  %v2756_v6 = vpop.f32.mrb[11].mxu1 }
 0x34e   : > { %v5589_v22 = vpack.c.bf16 %v2798_v17, %v2798_v17  ;;  %v7079_v51 = vadd.f32 %v9202_v42, %v2756_v6 }
 0x34f   : > { %2880 = vst.msk [vmem:[%s9212_s17 + $0x24] sm:$0xf] %vm2870_vm0, %v5590_v3  ;;  %v2801_v32 = vmul.f32 2.0, %v7078_v39 }
 0x350   : > { %2879 = vst.msk [vmem:[%s9212_s17 + $0x20] sm:$0xf] %vm2870_vm0, %v5589_v22  ;;  %v2800_v15 = vmul.f32 2.0, %v7079_v51  ;;  %v6472_v26 = vpop.f32.mrb[12].mxu1 }
 0x351   : > { %v5592_v28 = vpack.c.bf16 %v2801_v32, %v2801_v32  ;;  %v7080_v21 = vadd.f32 %v6472_v26, %v9202_v42  ;;  %v2768_v33 = vpop.f32.mrb[13].mxu1 }
 0x352   : > { %v5591_v1 = vpack.c.bf16 %v2800_v15, %v2800_v15  ;;  %v7081_v2 = vadd.f32 %v9202_v42, %v2768_v33 }
 0x353   : > { %2882 = vst.msk [vmem:[%s9212_s17 + $0x2c] sm:$0xf] %vm2870_vm0, %v5592_v28  ;;  %v2803_v49 = vmul.f32 2.0, %v7080_v21 }
 0x354   : > { %2881 = vst.msk [vmem:[%s9212_s17 + $0x28] sm:$0xf] %vm2870_vm0, %v5591_v1  ;;  %v2802_v0 = vmul.f32 2.0, %v7081_v2  ;;  %v6475_v9 = vpop.f32.mrb[14].mxu1 }
 0x355   : > { %v5594_v41 = vpack.c.bf16 %v2803_v49, %v2803_v49  ;;  %v7082_v12 = vadd.f32 %v6475_v9, %v9202_v42  ;;  %v2780_v57 = vpop.f32.mrb[15].mxu1 }
 0x356   : > { %v5593_v58 = vpack.c.bf16 %v2802_v0, %v2802_v0  ;;  %v7083_v20 = vadd.f32 %v9202_v42, %v2780_v57 }
 0x357   : > { %2884 = vst.msk [vmem:[%s9212_s17 + $0x34] sm:$0xf] %vm2870_vm0, %v5594_v41  ;;  %v2805_v38 = vmul.f32 2.0, %v7082_v12 }
 0x358   : > { %2883 = vst.msk [vmem:[%s9212_s17 + $0x30] sm:$0xf] %vm2870_vm0, %v5593_v58  ;;  %v2804_v36 = vmul.f32 2.0, %v7083_v20 }
 0x359   : > { %v5596_v14 = vpack.c.bf16 %v2805_v38, %v2805_v38 }
 0x35a   : > { %v5595_v50 = vpack.c.bf16 %v2804_v36, %v2804_v36 }
 0x35b   : > { %2886 = vst.msk [vmem:[%s9212_s17 + $0x3c] sm:$0xf] %vm2870_vm0, %v5596_v14 }
 0x35c   : > { %2885 = vst.msk [vmem:[%s9212_s17 + $0x38] sm:$0xf] %vm2870_vm0, %v5595_v50 }
 0x3f8   : > { %v6838_v53 = vpop.f32.mrb[16].mxu1 }
 0x3f9   : > { %v5245_v8 = vpop.f32.mrb[17].mxu1  ;;  %v7100_v56 = vadd.f32 %v6838_v53, %v9202_v42 }
 0x3fa   : > { %v7101_v4 = vadd.f32 %v9202_v42, %v5245_v8 }
 0x3fc   : > { %v6841_v24 = vpop.f32.mrb[18].mxu1  ;;  %5339 = vxpose.xlu0.b32.start [1/16] (narrow) %v7101_v4, 32 }
 0x3fd   : > { %v5257_v18 = vpop.f32.mrb[19].mxu1  ;;  %v7102_v5 = vadd.f32 %v6841_v24, %v9202_v42 }
 0x3fe   : > { %v7103_v62 = vadd.f32 %v9202_v42, %v5257_v18 }
 0x400   : > { %v6844_v59 = vpop.f32.mrb[20].mxu1  ;;  %5340 = vxpose.xlu0.b32.cont [2/16] (narrow) %v7100_v56, 32 }
 0x401   : > { %v5269_v35 = vpop.f32.mrb[21].mxu1  ;;  %v7104_v25 = vadd.f32 %v6844_v59, %v9202_v42 }
 0x402   : > { %v7105_v44 = vadd.f32 %v9202_v42, %v5269_v35 }
 0x404   : > { %v6847_v11 = vpop.f32.mrb[22].mxu1  ;;  %5341 = vxpose.xlu0.b32.cont [3/16] (narrow) %v7103_v62, 32 }
 0x405   : > { %v5281_v46 = vpop.f32.mrb[23].mxu1  ;;  %v7106_v16 = vadd.f32 %v6847_v11, %v9202_v42 }
 0x406   : > { %v7107_v10 = vadd.f32 %v9202_v42, %v5281_v46 }
 0x408   : > { %v6850_v60 = vpop.f32.mrb[24].mxu1  ;;  %5342 = vxpose.xlu0.b32.cont [4/16] (narrow) %v7102_v5, 32 }
 0x409   : > { %v5293_v13 = vpop.f32.mrb[25].mxu1  ;;  %v7108_v37 = vadd.f32 %v6850_v60, %v9202_v42 }
 0x40a   : > { %v7109_v52 = vadd.f32 %v9202_v42, %v5293_v13 }
 0x40c   : > { %v6853_v45 = vpop.f32.mrb[26].mxu1  ;;  %5343 = vxpose.xlu0.b32.cont [5/16] (narrow) %v7105_v44, 32 }
 0x40d   : > { %v5305_v23 = vpop.f32.mrb[27].mxu1  ;;  %v7110_v54 = vadd.f32 %v6853_v45, %v9202_v42 }
 0x40e   : > { %v7111_v30 = vadd.f32 %v9202_v42, %v5305_v23 }
 0x410   : > { %v6856_v31 = vpop.f32.mrb[28].mxu1  ;;  %5344 = vxpose.xlu0.b32.cont [6/16] (narrow) %v7104_v25, 32 }
 0x411   : > { %v5317_v63 = vpop.f32.mrb[29].mxu1  ;;  %v7112_v19 = vadd.f32 %v6856_v31, %v9202_v42 }
 0x412   : > { %v7113_v34 = vadd.f32 %v9202_v42, %v5317_v63 }
 0x414   : > { %v6859_v55 = vpop.f32.mrb[30].mxu1  ;;  %5345 = vxpose.xlu0.b32.cont [7/16] (narrow) %v7107_v10, 32 }
 0x415   : > { %v5329_v48 = vpop.f32.mrb[31].mxu1  ;;  %v7114_v40 = vadd.f32 %v6859_v55, %v9202_v42 }
 0x416   : > { %v7115_v27 = vadd.f32 %v9202_v42, %v5329_v48 }
 0x418   : > { %5346 = vxpose.xlu0.b32.cont [8/16] (narrow) %v7106_v16, 32 }
 0x41c   : > { %5347 = vxpose.xlu0.b32.cont [9/16] (narrow) %v7109_v52, 32 }
 0x420   : > { %5348 = vxpose.xlu0.b32.cont [10/16] (narrow) %v7108_v37, 32 }
 0x424   : > { %5349 = vxpose.xlu0.b32.cont [11/16] (narrow) %v7111_v30, 32 }
 0x428   : > { %5350 = vxpose.xlu0.b32.cont [12/16] (narrow) %v7110_v54, 32 }
 0x42c   : > { %5351 = vxpose.xlu0.b32.cont [13/16] (narrow) %v7113_v34, 32 }
 0x430   : > { %5352 = vxpose.xlu0.b32.cont [14/16] (narrow) %v7112_v19, 32 }
 0x434   : > { %5353 = vxpose.xlu0.b32.cont [15/16] (narrow) %v7115_v27, 32 }
 0x438   : > { %5354 = vxpose.xlu0.b32.end [16/16] (narrow) %v7114_v40, 32 }
 0x47c   : > { %v5355_v7 = vpop.trf.xlu0 }
 0x480   : > { %v5356_v47 = vpop.trf.xlu0 }
 0x481   : > { %v5604_v43 = vpack.c.bf16 %v5356_v47, %v5355_v7 }
 0x483   : > { %5605 = vst [vmem:[%s296_s20] sm:$0xff] %v5604_v43  }
 0x484   : > { %v5357_v29 = vpop.trf.xlu0 }
 0x488   : > { %v5358_v17 = vpop.trf.xlu0 }
 0x489   : > { %v5609_v42 = vpack.c.bf16 %v5358_v17, %v5357_v29 }
 0x48b   : > { %5611 = vst [vmem:[%s296_s20 + $0x8] sm:$0xff] %v5609_v42  }
 0x48c   : > { %7555 = shalt.err (!%p7552_p3)
}
 0x48d   : > { %s7556_s16 = scalar_lea.hbm %s9286_s8, 256  ;;  %s7560_s18 = scalar_lea.hbm %s9336_s7, 512 }
 0x48e   : > { %p7557_p4 = scmp.ne.s32.totalorder %s9286_s8, %s7556_s16  ;;  %p7561_p9 = scmp.lt.u32.totalorder %s9286_s8, %s9336_s7 }
 0x48f   : > { %p7562_p10 = scmp.lt.u32.totalorder %s7560_s18, %s7556_s16  ;;  %p7564_p12 = scmp.lt.u32.totalorder %s7556_s16, %s9286_s8 }
 0x490   : > { %p7558_p7 = pnand %p7557_p4, %p7688_p5 }
 0x491   : > { %p7563_p11 = por %p7562_p10, %p7561_p9 }
 0x492   : > { %p7559_p8 = pneg %p7558_p7 }
 0x493   : > { %p7565_p13 = por %p7564_p12, %p7563_p11 }
 0x495   : > { %p7566_p0 = pnand %p7565_p13, %p7559_p8 }
 0x497   : > { %7569 = shalt.err (!%p7566_p0)
}
 0x498   : > { %s7607_s23 = smov 64   ;;  %s7608_s29 = smov 128  }
 0x499   : > { %s7609_s13 = smov 4  }
 0x49a   : > { %7436 = dma.vmem_to_hbm [thread:$0]  (%p7688_p5), %s9281_s21, 256, %s9286_s8, %s9288_s9, %s7607_s23, %s7608_s29, %s7609_s13  }
 0x49b PF: > { %p7442_p1 = scmp.ge.s32.totalorder %s7604_s27, 2  ;;  %s5436_s28 = sand.u32 1, %s7592_s24  }
 0x49c   : > { %s5437_s14 = scalar_lea.sflag [#allocation3], %s5436_s28 }
 0x49d   : > { %p7439_p2 = pnand %p7442_p1, %p7692_p6 }
 0x49f   : > { %7587 = dma.done.wait (!%p7439_p2), %s5437_s14, 256  }
 0x4a0   : > { %7589 = vsyncadd (!%p7439_p2), %s5437_s14, 4294967040  ;;  %p18_p3 = scmp.ge.s32.totalorder %s7675_s30, 4   ;;  %s9363_s24 = smov %s7596_s25 }
 0x4a1   : > { %s9364_s25 = smov %s7600_s26  ;;  %s9365_s26 = smov %s7686_s10 }
 0x4a2   : > { %s9366_s27 = smov %s7675_s30  ;;  %20 = sbr.rel (!%p18_p3) target bundleno = 3 (0x3), region = 94 }
 0x4a9   :  { %5442 = vsyncpa [#allocation3], 1 }
 0x4aa   :  { %5444 = vsyncpa [#allocation3 + $0x1], 1 }

</bundles_post_ra>
